<compile_context>
chip_gen: v7x
topology: tpu7x:2x2x1
jax: 0.10.0
libtpu: 0.0.40
codegen_flags: <defaults>
</compile_context>

<pallas_src>
import jax
import jax.numpy as jnp
from jax.experimental import pallas as pl
from jax.experimental.pallas import tpu as pltpu


def _round_up(x, m):
    return (x + m - 1) // m * m


def _transe_score_kernel(gamma_ref, obj_ref, ent_ref, out_ref):
    # gamma_ref : SMEM (1,) f32             scalar-prefetched margin
    # obj_ref   : VMEM (B_pad, D_pad) f32   sub_emb + rel_emb, resident over grid
    # ent_ref   : VMEM (D_pad, TN)          entity tile: D on sublanes, N on lanes
    # out_ref   : VMEM (B_pad, TN) f32      sigmoid(gamma - L1 distance)
    obj = obj_ref[...]                                    # (B_pad, D_pad)
    ent = ent_ref[...].astype(jnp.float32)                # (D_pad, TN), bf16 -> f32
    b_pad, d_pad = obj.shape
    tile_n = out_ref.shape[1]

    # Accumulate the L1 distance over D with lane-dense (B_pad, TN) VPU adds.
    # Fully unrolled static loop (D is small); each step is a lane-broadcast of
    # one obj column, a sublane-broadcast of one entity row, then sub/abs/add.
    acc = jnp.zeros((b_pad, tile_n), jnp.float32)
    for d in range(d_pad):
        o_d = obj[:, d:d + 1]                             # (B_pad, 1)
        e_d = ent[d:d + 1, :]                             # (1, TN)
        acc = acc + jnp.abs(o_d - e_d)

    out_ref[...] = jax.nn.sigmoid(gamma_ref[0] - acc)


def _entity_block_specs(d_pad, tile_n, num_tiles):
    """Entity-tile BlockSpecs to try, most-optimized first."""
    index_map = lambda j, gamma_ref: (0, j)
    specs = []
    buffered = getattr(pl, "Buffered", None)
    if buffered is not None and num_tiles >= 3:
        try:
            specs.append(
                pl.BlockSpec((d_pad, tile_n), index_map,
                             pipeline_mode=buffered(3)))
        except TypeError:
            pass
    specs.append(pl.BlockSpec((d_pad, tile_n), index_map))
    return specs


def transe_score(sub_emb, rel_emb, all_ent, gamma, *, tile_n=512,
                 ent_dtype=jnp.bfloat16):
    """score[b,n] = sigmoid(gamma - sum_d |sub_emb[b,d] + rel_emb[b,d] - all_ent[n,d]|)."""
    B, D = sub_emb.shape
    N, D2 = all_ent.shape
    assert D == D2
    assert tile_n % 128 == 0

    # obj = sub + rel computed once here (one fewer resident input in the kernel).
    obj = (sub_emb + rel_emb).astype(jnp.float32)

    # Pad: batch -> multiple of 8 sublanes, D -> multiple of 8, entities ->
    # multiple of tile_n.  Zero padding is exact: padded D rows contribute
    # |0 - 0| = 0; padded batch rows / entity columns are sliced off below.
    B_pad = _round_up(B, 8)
    D_pad = _round_up(D, 8)
    N_pad = _round_up(N, tile_n)
    num_tiles = N_pad // tile_n

    obj_p = jnp.pad(obj, ((0, B_pad - B), (0, D_pad - D)))
    ent_t = jnp.pad(all_ent.astype(jnp.float32),
                    ((0, N_pad - N), (0, D_pad - D))).T.astype(ent_dtype)
    gamma_arr = jnp.full((1,), gamma, jnp.float32)

    ent_bytes = N_pad * D_pad * jnp.dtype(ent_dtype).itemsize
    cost = pl.CostEstimate(
        flops=3 * B_pad * N_pad * D_pad,
        transcendentals=B_pad * N_pad,
        bytes_accessed=ent_bytes + B_pad * D_pad * 4 + B_pad * N_pad * 4)

    obj_spec = pl.BlockSpec((B_pad, D_pad), lambda j, gamma_ref: (0, 0))
    out_spec = pl.BlockSpec((B_pad, tile_n), lambda j, gamma_ref: (0, j))

    out = None
    last_err = None
    for ent_spec in _entity_block_specs(D_pad, tile_n, num_tiles):
        try:
            out = pl.pallas_call(
                _transe_score_kernel,
                out_shape=jax.ShapeDtypeStruct((B_pad, N_pad), jnp.float32),
                grid_spec=pltpu.PrefetchScalarGridSpec(
                    num_scalar_prefetch=1,
                    grid=(num_tiles,),
                    in_specs=[obj_spec, ent_spec],
                    out_specs=out_spec,
                ),
                compiler_params=pltpu.CompilerParams(
                    dimension_semantics=("parallel",)),
                cost_estimate=cost,
            )(gamma_arr, obj_p, ent_t)
            break
        except Exception as err:  # fall back if Buffered(3) is unsupported
            last_err = err
            out = None
    if out is None:
        raise last_err
    return out[:B, :N]


def init_params(key, num_ent, num_rel, embed_dim, gamma=9.0):
    """Deterministic synthetic parameters (xavier-normal-ish scale)."""
    k_ent, k_rel = jax.random.split(key, 2)
    scale = (2.0 / (num_ent + embed_dim)) ** 0.5
    init_embed = scale * jax.random.normal(k_ent, (num_ent, embed_dim), jnp.float32)
    scale_r = (2.0 / (num_rel + embed_dim)) ** 0.5
    init_rel = scale_r * jax.random.normal(k_rel, (num_rel, embed_dim), jnp.float32)
    return {"init_embed": init_embed, "init_rel": init_rel, "gamma": gamma}


def compgcn_transe_forward(params, sub, rel, *, tile_n=512,
                           ent_dtype=jnp.bfloat16):
    """Mirrors CompGCN_TransE.forward (GCN conv layers omitted, see TODO above)."""
    init_embed = params["init_embed"]                    # (num_ent, D)
    init_rel = params["init_rel"]                        # (num_rel, D)
    # score_func == 'transe': r = cat([init_rel, -init_rel], dim=0)
    r = jnp.concatenate([init_rel, -init_rel], axis=0)   # (2*num_rel, D)
    x = init_embed                                       # all entity embeddings
    sub_emb = x[sub]                                     # index_select(x, 0, sub)
    rel_emb = r[rel]                                     # index_select(r, 0, rel)
    return transe_score(sub_emb, rel_emb, x, params["gamma"],
                        tile_n=tile_n, ent_dtype=ent_dtype)


if __name__ == "__main__":
    num_ent, num_rel, embed_dim, batch = 2000, 8, 32, 4
    gamma = 9.0

    key = jax.random.PRNGKey(0)
    k_param, k_sub, k_rel = jax.random.split(key, 3)
    params = init_params(k_param, num_ent, num_rel, embed_dim, gamma)
    sub = jax.random.randint(k_sub, (batch,), 0, num_ent, dtype=jnp.int32)
    rel = jax.random.randint(k_rel, (batch,), 0, 2 * num_rel, dtype=jnp.int32)

    score = compgcn_transe_forward(params, sub, rel)
    jax.block_until_ready(score)

    # pure-JAX reference of the same semantics (entity table rounded through
    # bf16, matching the kernel's streamed dtype; all arithmetic in f32).
    r_full = jnp.concatenate([params["init_rel"], -params["init_rel"]], axis=0)
    obj = params["init_embed"][sub] + r_full[rel]
    ent = params["init_embed"].astype(jnp.bfloat16).astype(jnp.float32)
    ref = jax.nn.sigmoid(
        gamma - jnp.sum(jnp.abs(obj[:, None, :] - ent[None, :, :]), axis=2))
    assert score.shape == (batch, num_ent)
    assert jnp.allclose(score, ref, atol=1e-4), "mismatch vs reference"

    print("KERNEL_OK")
</pallas_src>

<mosaic_0001>
module attributes {stable_mosaic.version = 11 : i64} {
  func.func @_transe_score_kernel(%arg0: i32, %arg1: memref<1xf32, #tpu.memory_space<smem>>, %arg2: memref<8x32xf32, #tpu.memory_space<vmem>>, %arg3: memref<32x512xbf16, #tpu.memory_space<vmem>>, %arg4: memref<8x512xf32, #tpu.memory_space<vmem>>) attributes {dimension_semantics = [#tpu.dimension_semantics<parallel>], iteration_bounds = array<i64: 4>, scalar_prefetch = 1 : i64, scratch_operands = 0 : i64, tpu.core_type = #tpu.core_type<tc>, window_params = [{pipeline_mode = #tpu.pipeline_mode<synchronous>, transform_indices = @transform_0, window_bounds = array<i64: 8, 32>}, {transform_indices = @transform_1, window_bounds = array<i64: 32, 512>}, {transform_indices = @transform_2, window_bounds = array<i64: 8, 512>}]} {
    %c0 = arith.constant 0 : index
    %c0_0 = arith.constant 0 : index
    %0 = vector.load %arg2[%c0, %c0_0] : memref<8x32xf32, #tpu.memory_space<vmem>>, vector<8x32xf32>
    %c0_1 = arith.constant 0 : index
    %c0_2 = arith.constant 0 : index
    %1 = vector.load %arg3[%c0_1, %c0_2] : memref<32x512xbf16, #tpu.memory_space<vmem>>, vector<32x512xbf16>
    %2 = arith.extf %1 : vector<32x512xbf16> to vector<32x512xf32>
    %cst = arith.constant 0.000000e+00 : f32
    %3 = vector.broadcast %cst : f32 to vector<8x512xf32>
    %4 = vector.extract_strided_slice %0 {offsets = [0, 0], sizes = [8, 1], strides = [1, 1]} : vector<8x32xf32> to vector<8x1xf32>
    %5 = vector.extract_strided_slice %2 {offsets = [0, 0], sizes = [1, 512], strides = [1, 1]} : vector<32x512xf32> to vector<1x512xf32>
    %6 = vector.broadcast %4 : vector<8x1xf32> to vector<8x512xf32>
    %7 = vector.broadcast %5 : vector<1x512xf32> to vector<8x512xf32>
    %8 = arith.subf %6, %7 : vector<8x512xf32>
    %9 = math.absf %8 : vector<8x512xf32>
    %10 = arith.addf %3, %9 : vector<8x512xf32>
    %11 = vector.extract_strided_slice %0 {offsets = [0, 1], sizes = [8, 1], strides = [1, 1]} : vector<8x32xf32> to vector<8x1xf32>
    %12 = vector.extract_strided_slice %2 {offsets = [1, 0], sizes = [1, 512], strides = [1, 1]} : vector<32x512xf32> to vector<1x512xf32>
    %13 = vector.broadcast %11 : vector<8x1xf32> to vector<8x512xf32>
    %14 = vector.broadcast %12 : vector<1x512xf32> to vector<8x512xf32>
    %15 = arith.subf %13, %14 : vector<8x512xf32>
    %16 = math.absf %15 : vector<8x512xf32>
    %17 = arith.addf %10, %16 : vector<8x512xf32>
    %18 = vector.extract_strided_slice %0 {offsets = [0, 2], sizes = [8, 1], strides = [1, 1]} : vector<8x32xf32> to vector<8x1xf32>
    %19 = vector.extract_strided_slice %2 {offsets = [2, 0], sizes = [1, 512], strides = [1, 1]} : vector<32x512xf32> to vector<1x512xf32>
    %20 = vector.broadcast %18 : vector<8x1xf32> to vector<8x512xf32>
    %21 = vector.broadcast %19 : vector<1x512xf32> to vector<8x512xf32>
    %22 = arith.subf %20, %21 : vector<8x512xf32>
    %23 = math.absf %22 : vector<8x512xf32>
    %24 = arith.addf %17, %23 : vector<8x512xf32>
    %25 = vector.extract_strided_slice %0 {offsets = [0, 3], sizes = [8, 1], strides = [1, 1]} : vector<8x32xf32> to vector<8x1xf32>
    %26 = vector.extract_strided_slice %2 {offsets = [3, 0], sizes = [1, 512], strides = [1, 1]} : vector<32x512xf32> to vector<1x512xf32>
    %27 = vector.broadcast %25 : vector<8x1xf32> to vector<8x512xf32>
    %28 = vector.broadcast %26 : vector<1x512xf32> to vector<8x512xf32>
    %29 = arith.subf %27, %28 : vector<8x512xf32>
    %30 = math.absf %29 : vector<8x512xf32>
    %31 = arith.addf %24, %30 : vector<8x512xf32>
    %32 = vector.extract_strided_slice %0 {offsets = [0, 4], sizes = [8, 1], strides = [1, 1]} : vector<8x32xf32> to vector<8x1xf32>
    %33 = vector.extract_strided_slice %2 {offsets = [4, 0], sizes = [1, 512], strides = [1, 1]} : vector<32x512xf32> to vector<1x512xf32>
    %34 = vector.broadcast %32 : vector<8x1xf32> to vector<8x512xf32>
    %35 = vector.broadcast %33 : vector<1x512xf32> to vector<8x512xf32>
    %36 = arith.subf %34, %35 : vector<8x512xf32>
    %37 = math.absf %36 : vector<8x512xf32>
    %38 = arith.addf %31, %37 : vector<8x512xf32>
    %39 = vector.extract_strided_slice %0 {offsets = [0, 5], sizes = [8, 1], strides = [1, 1]} : vector<8x32xf32> to vector<8x1xf32>
    %40 = vector.extract_strided_slice %2 {offsets = [5, 0], sizes = [1, 512], strides = [1, 1]} : vector<32x512xf32> to vector<1x512xf32>
    %41 = vector.broadcast %39 : vector<8x1xf32> to vector<8x512xf32>
    %42 = vector.broadcast %40 : vector<1x512xf32> to vector<8x512xf32>
    %43 = arith.subf %41, %42 : vector<8x512xf32>
    %44 = math.absf %43 : vector<8x512xf32>
    %45 = arith.addf %38, %44 : vector<8x512xf32>
    %46 = vector.extract_strided_slice %0 {offsets = [0, 6], sizes = [8, 1], strides = [1, 1]} : vector<8x32xf32> to vector<8x1xf32>
    %47 = vector.extract_strided_slice %2 {offsets = [6, 0], sizes = [1, 512], strides = [1, 1]} : vector<32x512xf32> to vector<1x512xf32>
    %48 = vector.broadcast %46 : vector<8x1xf32> to vector<8x512xf32>
    %49 = vector.broadcast %47 : vector<1x512xf32> to vector<8x512xf32>
    %50 = arith.subf %48, %49 : vector<8x512xf32>
    %51 = math.absf %50 : vector<8x512xf32>
    %52 = arith.addf %45, %51 : vector<8x512xf32>
    %53 = vector.extract_strided_slice %0 {offsets = [0, 7], sizes = [8, 1], strides = [1, 1]} : vector<8x32xf32> to vector<8x1xf32>
    %54 = vector.extract_strided_slice %2 {offsets = [7, 0], sizes = [1, 512], strides = [1, 1]} : vector<32x512xf32> to vector<1x512xf32>
    %55 = vector.broadcast %53 : vector<8x1xf32> to vector<8x512xf32>
    %56 = vector.broadcast %54 : vector<1x512xf32> to vector<8x512xf32>
    %57 = arith.subf %55, %56 : vector<8x512xf32>
    %58 = math.absf %57 : vector<8x512xf32>
    %59 = arith.addf %52, %58 : vector<8x512xf32>
    %60 = vector.extract_strided_slice %0 {offsets = [0, 8], sizes = [8, 1], strides = [1, 1]} : vector<8x32xf32> to vector<8x1xf32>
    %61 = vector.extract_strided_slice %2 {offsets = [8, 0], sizes = [1, 512], strides = [1, 1]} : vector<32x512xf32> to vector<1x512xf32>
    %62 = vector.broadcast %60 : vector<8x1xf32> to vector<8x512xf32>
    %63 = vector.broadcast %61 : vector<1x512xf32> to vector<8x512xf32>
    %64 = arith.subf %62, %63 : vector<8x512xf32>
    %65 = math.absf %64 : vector<8x512xf32>
    %66 = arith.addf %59, %65 : vector<8x512xf32>
    %67 = vector.extract_strided_slice %0 {offsets = [0, 9], sizes = [8, 1], strides = [1, 1]} : vector<8x32xf32> to vector<8x1xf32>
    %68 = vector.extract_strided_slice %2 {offsets = [9, 0], sizes = [1, 512], strides = [1, 1]} : vector<32x512xf32> to vector<1x512xf32>
    %69 = vector.broadcast %67 : vector<8x1xf32> to vector<8x512xf32>
    %70 = vector.broadcast %68 : vector<1x512xf32> to vector<8x512xf32>
    %71 = arith.subf %69, %70 : vector<8x512xf32>
    %72 = math.absf %71 : vector<8x512xf32>
    %73 = arith.addf %66, %72 : vector<8x512xf32>
    %74 = vector.extract_strided_slice %0 {offsets = [0, 10], sizes = [8, 1], strides = [1, 1]} : vector<8x32xf32> to vector<8x1xf32>
    %75 = vector.extract_strided_slice %2 {offsets = [10, 0], sizes = [1, 512], strides = [1, 1]} : vector<32x512xf32> to vector<1x512xf32>
    %76 = vector.broadcast %74 : vector<8x1xf32> to vector<8x512xf32>
    %77 = vector.broadcast %75 : vector<1x512xf32> to vector<8x512xf32>
    %78 = arith.subf %76, %77 : vector<8x512xf32>
    %79 = math.absf %78 : vector<8x512xf32>
    %80 = arith.addf %73, %79 : vector<8x512xf32>
    %81 = vector.extract_strided_slice %0 {offsets = [0, 11], sizes = [8, 1], strides = [1, 1]} : vector<8x32xf32> to vector<8x1xf32>
    %82 = vector.extract_strided_slice %2 {offsets = [11, 0], sizes = [1, 512], strides = [1, 1]} : vector<32x512xf32> to vector<1x512xf32>
    %83 = vector.broadcast %81 : vector<8x1xf32> to vector<8x512xf32>
    %84 = vector.broadcast %82 : vector<1x512xf32> to vector<8x512xf32>
    %85 = arith.subf %83, %84 : vector<8x512xf32>
    %86 = math.absf %85 : vector<8x512xf32>
    %87 = arith.addf %80, %86 : vector<8x512xf32>
    %88 = vector.extract_strided_slice %0 {offsets = [0, 12], sizes = [8, 1], strides = [1, 1]} : vector<8x32xf32> to vector<8x1xf32>
    %89 = vector.extract_strided_slice %2 {offsets = [12, 0], sizes = [1, 512], strides = [1, 1]} : vector<32x512xf32> to vector<1x512xf32>
    %90 = vector.broadcast %88 : vector<8x1xf32> to vector<8x512xf32>
    %91 = vector.broadcast %89 : vector<1x512xf32> to vector<8x512xf32>
    %92 = arith.subf %90, %91 : vector<8x512xf32>
    %93 = math.absf %92 : vector<8x512xf32>
    %94 = arith.addf %87, %93 : vector<8x512xf32>
    %95 = vector.extract_strided_slice %0 {offsets = [0, 13], sizes = [8, 1], strides = [1, 1]} : vector<8x32xf32> to vector<8x1xf32>
    %96 = vector.extract_strided_slice %2 {offsets = [13, 0], sizes = [1, 512], strides = [1, 1]} : vector<32x512xf32> to vector<1x512xf32>
    %97 = vector.broadcast %95 : vector<8x1xf32> to vector<8x512xf32>
    %98 = vector.broadcast %96 : vector<1x512xf32> to vector<8x512xf32>
    %99 = arith.subf %97, %98 : vector<8x512xf32>
    %100 = math.absf %99 : vector<8x512xf32>
    %101 = arith.addf %94, %100 : vector<8x512xf32>
    %102 = vector.extract_strided_slice %0 {offsets = [0, 14], sizes = [8, 1], strides = [1, 1]} : vector<8x32xf32> to vector<8x1xf32>
    %103 = vector.extract_strided_slice %2 {offsets = [14, 0], sizes = [1, 512], strides = [1, 1]} : vector<32x512xf32> to vector<1x512xf32>
    %104 = vector.broadcast %102 : vector<8x1xf32> to vector<8x512xf32>
    %105 = vector.broadcast %103 : vector<1x512xf32> to vector<8x512xf32>
    %106 = arith.subf %104, %105 : vector<8x512xf32>
    %107 = math.absf %106 : vector<8x512xf32>
    %108 = arith.addf %101, %107 : vector<8x512xf32>
    %109 = vector.extract_strided_slice %0 {offsets = [0, 15], sizes = [8, 1], strides = [1, 1]} : vector<8x32xf32> to vector<8x1xf32>
    %110 = vector.extract_strided_slice %2 {offsets = [15, 0], sizes = [1, 512], strides = [1, 1]} : vector<32x512xf32> to vector<1x512xf32>
    %111 = vector.broadcast %109 : vector<8x1xf32> to vector<8x512xf32>
    %112 = vector.broadcast %110 : vector<1x512xf32> to vector<8x512xf32>
    %113 = arith.subf %111, %112 : vector<8x512xf32>
    %114 = math.absf %113 : vector<8x512xf32>
    %115 = arith.addf %108, %114 : vector<8x512xf32>
    %116 = vector.extract_strided_slice %0 {offsets = [0, 16], sizes = [8, 1], strides = [1, 1]} : vector<8x32xf32> to vector<8x1xf32>
    %117 = vector.extract_strided_slice %2 {offsets = [16, 0], sizes = [1, 512], strides = [1, 1]} : vector<32x512xf32> to vector<1x512xf32>
    %118 = vector.broadcast %116 : vector<8x1xf32> to vector<8x512xf32>
    %119 = vector.broadcast %117 : vector<1x512xf32> to vector<8x512xf32>
    %120 = arith.subf %118, %119 : vector<8x512xf32>
    %121 = math.absf %120 : vector<8x512xf32>
    %122 = arith.addf %115, %121 : vector<8x512xf32>
    %123 = vector.extract_strided_slice %0 {offsets = [0, 17], sizes = [8, 1], strides = [1, 1]} : vector<8x32xf32> to vector<8x1xf32>
    %124 = vector.extract_strided_slice %2 {offsets = [17, 0], sizes = [1, 512], strides = [1, 1]} : vector<32x512xf32> to vector<1x512xf32>
    %125 = vector.broadcast %123 : vector<8x1xf32> to vector<8x512xf32>
    %126 = vector.broadcast %124 : vector<1x512xf32> to vector<8x512xf32>
    %127 = arith.subf %125, %126 : vector<8x512xf32>
    %128 = math.absf %127 : vector<8x512xf32>
    %129 = arith.addf %122, %128 : vector<8x512xf32>
    %130 = vector.extract_strided_slice %0 {offsets = [0, 18], sizes = [8, 1], strides = [1, 1]} : vector<8x32xf32> to vector<8x1xf32>
    %131 = vector.extract_strided_slice %2 {offsets = [18, 0], sizes = [1, 512], strides = [1, 1]} : vector<32x512xf32> to vector<1x512xf32>
    %132 = vector.broadcast %130 : vector<8x1xf32> to vector<8x512xf32>
    %133 = vector.broadcast %131 : vector<1x512xf32> to vector<8x512xf32>
    %134 = arith.subf %132, %133 : vector<8x512xf32>
    %135 = math.absf %134 : vector<8x512xf32>
    %136 = arith.addf %129, %135 : vector<8x512xf32>
    %137 = vector.extract_strided_slice %0 {offsets = [0, 19], sizes = [8, 1], strides = [1, 1]} : vector<8x32xf32> to vector<8x1xf32>
    %138 = vector.extract_strided_slice %2 {offsets = [19, 0], sizes = [1, 512], strides = [1, 1]} : vector<32x512xf32> to vector<1x512xf32>
    %139 = vector.broadcast %137 : vector<8x1xf32> to vector<8x512xf32>
    %140 = vector.broadcast %138 : vector<1x512xf32> to vector<8x512xf32>
    %141 = arith.subf %139, %140 : vector<8x512xf32>
    %142 = math.absf %141 : vector<8x512xf32>
    %143 = arith.addf %136, %142 : vector<8x512xf32>
    %144 = vector.extract_strided_slice %0 {offsets = [0, 20], sizes = [8, 1], strides = [1, 1]} : vector<8x32xf32> to vector<8x1xf32>
    %145 = vector.extract_strided_slice %2 {offsets = [20, 0], sizes = [1, 512], strides = [1, 1]} : vector<32x512xf32> to vector<1x512xf32>
    %146 = vector.broadcast %144 : vector<8x1xf32> to vector<8x512xf32>
    %147 = vector.broadcast %145 : vector<1x512xf32> to vector<8x512xf32>
    %148 = arith.subf %146, %147 : vector<8x512xf32>
    %149 = math.absf %148 : vector<8x512xf32>
    %150 = arith.addf %143, %149 : vector<8x512xf32>
    %151 = vector.extract_strided_slice %0 {offsets = [0, 21], sizes = [8, 1], strides = [1, 1]} : vector<8x32xf32> to vector<8x1xf32>
    %152 = vector.extract_strided_slice %2 {offsets = [21, 0], sizes = [1, 512], strides = [1, 1]} : vector<32x512xf32> to vector<1x512xf32>
    %153 = vector.broadcast %151 : vector<8x1xf32> to vector<8x512xf32>
    %154 = vector.broadcast %152 : vector<1x512xf32> to vector<8x512xf32>
    %155 = arith.subf %153, %154 : vector<8x512xf32>
    %156 = math.absf %155 : vector<8x512xf32>
    %157 = arith.addf %150, %156 : vector<8x512xf32>
    %158 = vector.extract_strided_slice %0 {offsets = [0, 22], sizes = [8, 1], strides = [1, 1]} : vector<8x32xf32> to vector<8x1xf32>
    %159 = vector.extract_strided_slice %2 {offsets = [22, 0], sizes = [1, 512], strides = [1, 1]} : vector<32x512xf32> to vector<1x512xf32>
    %160 = vector.broadcast %158 : vector<8x1xf32> to vector<8x512xf32>
    %161 = vector.broadcast %159 : vector<1x512xf32> to vector<8x512xf32>
    %162 = arith.subf %160, %161 : vector<8x512xf32>
    %163 = math.absf %162 : vector<8x512xf32>
    %164 = arith.addf %157, %163 : vector<8x512xf32>
    %165 = vector.extract_strided_slice %0 {offsets = [0, 23], sizes = [8, 1], strides = [1, 1]} : vector<8x32xf32> to vector<8x1xf32>
    %166 = vector.extract_strided_slice %2 {offsets = [23, 0], sizes = [1, 512], strides = [1, 1]} : vector<32x512xf32> to vector<1x512xf32>
    %167 = vector.broadcast %165 : vector<8x1xf32> to vector<8x512xf32>
    %168 = vector.broadcast %166 : vector<1x512xf32> to vector<8x512xf32>
    %169 = arith.subf %167, %168 : vector<8x512xf32>
    %170 = math.absf %169 : vector<8x512xf32>
    %171 = arith.addf %164, %170 : vector<8x512xf32>
    %172 = vector.extract_strided_slice %0 {offsets = [0, 24], sizes = [8, 1], strides = [1, 1]} : vector<8x32xf32> to vector<8x1xf32>
    %173 = vector.extract_strided_slice %2 {offsets = [24, 0], sizes = [1, 512], strides = [1, 1]} : vector<32x512xf32> to vector<1x512xf32>
    %174 = vector.broadcast %172 : vector<8x1xf32> to vector<8x512xf32>
    %175 = vector.broadcast %173 : vector<1x512xf32> to vector<8x512xf32>
    %176 = arith.subf %174, %175 : vector<8x512xf32>
    %177 = math.absf %176 : vector<8x512xf32>
    %178 = arith.addf %171, %177 : vector<8x512xf32>
    %179 = vector.extract_strided_slice %0 {offsets = [0, 25], sizes = [8, 1], strides = [1, 1]} : vector<8x32xf32> to vector<8x1xf32>
    %180 = vector.extract_strided_slice %2 {offsets = [25, 0], sizes = [1, 512], strides = [1, 1]} : vector<32x512xf32> to vector<1x512xf32>
    %181 = vector.broadcast %179 : vector<8x1xf32> to vector<8x512xf32>
    %182 = vector.broadcast %180 : vector<1x512xf32> to vector<8x512xf32>
    %183 = arith.subf %181, %182 : vector<8x512xf32>
    %184 = math.absf %183 : vector<8x512xf32>
    %185 = arith.addf %178, %184 : vector<8x512xf32>
    %186 = vector.extract_strided_slice %0 {offsets = [0, 26], sizes = [8, 1], strides = [1, 1]} : vector<8x32xf32> to vector<8x1xf32>
    %187 = vector.extract_strided_slice %2 {offsets = [26, 0], sizes = [1, 512], strides = [1, 1]} : vector<32x512xf32> to vector<1x512xf32>
    %188 = vector.broadcast %186 : vector<8x1xf32> to vector<8x512xf32>
    %189 = vector.broadcast %187 : vector<1x512xf32> to vector<8x512xf32>
    %190 = arith.subf %188, %189 : vector<8x512xf32>
    %191 = math.absf %190 : vector<8x512xf32>
    %192 = arith.addf %185, %191 : vector<8x512xf32>
    %193 = vector.extract_strided_slice %0 {offsets = [0, 27], sizes = [8, 1], strides = [1, 1]} : vector<8x32xf32> to vector<8x1xf32>
    %194 = vector.extract_strided_slice %2 {offsets = [27, 0], sizes = [1, 512], strides = [1, 1]} : vector<32x512xf32> to vector<1x512xf32>
    %195 = vector.broadcast %193 : vector<8x1xf32> to vector<8x512xf32>
    %196 = vector.broadcast %194 : vector<1x512xf32> to vector<8x512xf32>
    %197 = arith.subf %195, %196 : vector<8x512xf32>
    %198 = math.absf %197 : vector<8x512xf32>
    %199 = arith.addf %192, %198 : vector<8x512xf32>
    %200 = vector.extract_strided_slice %0 {offsets = [0, 28], sizes = [8, 1], strides = [1, 1]} : vector<8x32xf32> to vector<8x1xf32>
    %201 = vector.extract_strided_slice %2 {offsets = [28, 0], sizes = [1, 512], strides = [1, 1]} : vector<32x512xf32> to vector<1x512xf32>
    %202 = vector.broadcast %200 : vector<8x1xf32> to vector<8x512xf32>
    %203 = vector.broadcast %201 : vector<1x512xf32> to vector<8x512xf32>
    %204 = arith.subf %202, %203 : vector<8x512xf32>
    %205 = math.absf %204 : vector<8x512xf32>
    %206 = arith.addf %199, %205 : vector<8x512xf32>
    %207 = vector.extract_strided_slice %0 {offsets = [0, 29], sizes = [8, 1], strides = [1, 1]} : vector<8x32xf32> to vector<8x1xf32>
    %208 = vector.extract_strided_slice %2 {offsets = [29, 0], sizes = [1, 512], strides = [1, 1]} : vector<32x512xf32> to vector<1x512xf32>
    %209 = vector.broadcast %207 : vector<8x1xf32> to vector<8x512xf32>
    %210 = vector.broadcast %208 : vector<1x512xf32> to vector<8x512xf32>
    %211 = arith.subf %209, %210 : vector<8x512xf32>
    %212 = math.absf %211 : vector<8x512xf32>
    %213 = arith.addf %206, %212 : vector<8x512xf32>
    %214 = vector.extract_strided_slice %0 {offsets = [0, 30], sizes = [8, 1], strides = [1, 1]} : vector<8x32xf32> to vector<8x1xf32>
    %215 = vector.extract_strided_slice %2 {offsets = [30, 0], sizes = [1, 512], strides = [1, 1]} : vector<32x512xf32> to vector<1x512xf32>
    %216 = vector.broadcast %214 : vector<8x1xf32> to vector<8x512xf32>
    %217 = vector.broadcast %215 : vector<1x512xf32> to vector<8x512xf32>
    %218 = arith.subf %216, %217 : vector<8x512xf32>
    %219 = math.absf %218 : vector<8x512xf32>
    %220 = arith.addf %213, %219 : vector<8x512xf32>
    %221 = vector.extract_strided_slice %0 {offsets = [0, 31], sizes = [8, 1], strides = [1, 1]} : vector<8x32xf32> to vector<8x1xf32>
    %222 = vector.extract_strided_slice %2 {offsets = [31, 0], sizes = [1, 512], strides = [1, 1]} : vector<32x512xf32> to vector<1x512xf32>
    %223 = vector.broadcast %221 : vector<8x1xf32> to vector<8x512xf32>
    %224 = vector.broadcast %222 : vector<1x512xf32> to vector<8x512xf32>
    %225 = arith.subf %223, %224 : vector<8x512xf32>
    %226 = math.absf %225 : vector<8x512xf32>
    %227 = arith.addf %220, %226 : vector<8x512xf32>
    %c0_3 = arith.constant 0 : index
    %228 = memref.load %arg1[%c0_3] : memref<1xf32, #tpu.memory_space<smem>>
    %229 = vector.broadcast %228 : f32 to vector<8x512xf32>
    %230 = arith.subf %229, %227 : vector<8x512xf32>
    %231 = arith.negf %230 : vector<8x512xf32>
    %232 = math.exp %231 : vector<8x512xf32>
    %cst_4 = arith.constant 1.000000e+00 : f32
    %233 = vector.broadcast %cst_4 : f32 to vector<8x512xf32>
    %234 = arith.addf %233, %232 : vector<8x512xf32>
    %235 = arith.divf %233, %234 : vector<8x512xf32>
    %c0_5 = arith.constant 0 : index
    %c0_6 = arith.constant 0 : index
    %236 = vector.load %arg4[%c0_5, %c0_6] : memref<8x512xf32, #tpu.memory_space<vmem>>, vector<8x512xf32>
    tpu.vector_store %arg4[%c0_5, %c0_6], %235 {strides = array<i32>} : memref<8x512xf32, #tpu.memory_space<vmem>>, vector<8x512xf32>,
    return
  }
  func.func @transform_0(%arg0: i32, %arg1: memref<1xf32, #tpu.memory_space<smem>>) -> (i32, i32) {
    %c0_i32 = arith.constant 0 : i32
    %c0_i32_0 = arith.constant 0 : i32
    %c0_i32_1 = arith.constant 0 : i32
    return %c0_i32, %c0_i32_0 : i32, i32
  }
  func.func @transform_1(%arg0: i32, %arg1: memref<1xf32, #tpu.memory_space<smem>>) -> (i32, i32) {
    %c0_i32 = arith.constant 0 : i32
    %c0_i32_0 = arith.constant 0 : i32
    return %c0_i32, %arg0 : i32, i32
  }
  func.func @transform_2(%arg0: i32, %arg1: memref<1xf32, #tpu.memory_space<smem>>) -> (i32, i32) {
    %c0_i32 = arith.constant 0 : i32
    %c0_i32_0 = arith.constant 0 : i32
    return %c0_i32, %arg0 : i32, i32
  }
}

</mosaic_0001>

<bundles_post_ra>
// kernel: tpu_custom_call.1
= control target key start
LH: loop header
LB: loop body
LE: loop exit
PB: predicated region body
PF: predicated region fallthrough
CT: control target
= control target key end

     0   :  { %s2605_s0 = inlined_call_operand.<no memory space> [shape: f32[1], index: 0, kind: input, shape index: {}]   ;;  %s2606_s1 = inlined_call_operand.hbm [shape: f32[8,32], index: 1, kind: input, shape index: {}]   ;;  %s2607_s2 = inlined_call_operand.hbm [shape: bf16[32,2048], index: 2, kind: input, shape index: {}]   ;;  %s2608_s3 = inlined_call_operand.hbm [shape: f32[8,2048], index: 3, kind: output, shape index: {}]  }
   0x1   :  { %8 = sst [smem:[#allocation3]] %s2605_s0 }
   0x2   :  { %9 = vsyncpa [#allocation5], 0 }
   0x3   :  { %10 = vsyncpa [#allocation8], 0 }
   0x4   :  { %12 = vsyncpa [#allocation8 + $0x1], 0 }
   0x5   :  { %13 = vsyncpa [#allocation6], 0 }
   0x6   :  { %15 = vsyncpa [#allocation6 + $0x1], 0  ;;  %s1714_s14 = smov 0   ;;  %s1716_s15 = smov 0  }
   0x7   :  { %s1718_s16 = smov 0   ;;  %s1720_s17 = smov 0  }
   0x8 LB: > { %s1735_s0 = sadd.s32 4294967295, %s1651_s17   ;;  %s1360_s18 = sadd.s32 4294967294, %s1651_s17   ;;  %s1651_s17 = sphi %s1720_s17, %s2707_s17   ;;  %s1647_s16 = sphi %s1718_s16, %s2706_s16   ;;  %s1643_s15 = sphi %s1716_s15, %s2705_s15   ;;  %s1639_s14 = sphi %s1714_s14, %s2704_s14  }
   0x9   : > { %s1739_s19 = sadd.s32 1, %s1651_s17   ;;  %s49_s20 = sadd.s32 1, %s1647_s16 }
   0xa   : > { %s46_s21 = ssub.s32 %s1651_s17, %s1739_s19  ;;  %p56_p0 = scmp.ne.s32.totalorder %s1647_s16, %s1643_s15 }
   0xb   : > { %p47_p1 = scmp.eq.s32.totalorder %s46_s21, 0  ;;  %p57_p2 = scmp.eq.s32.totalorder %s1651_s17, 0 }
   0xc   : > { %p62_p3 = scmp.ne.s32.totalorder %s1643_s15, %s1639_s14  ;;  %p2609_p4 = scmp.eq.s32.totalorder %s1735_s0, 0 }
   0xd   : > { %s1751_s22 = scalar_select %p47_p1, %s1647_s16, %s49_s20  }
   0xe   : > { %p1753_p5 = por %p57_p2, %p56_p0  ;;  %p1759_p6 = por %p2609_p4, %p62_p3 }
   0xf   : > { %p86_p7 = scmp.eq.s32.totalorder %s1735_s0, 3  ;;  %p92_p8 = scmp.eq.s32.totalorder %s1360_s18, 3 }
  0x10   : > { %s2615_s24 = scalar_select %p1759_p6, 1, 0 }
  0x11   : > { %p1361_p9 = scmp.ge.s32.totalorder %s1651_s17, 1  ;;  %p99_p10 = scmp.lt.s32.totalorder %s1651_s17, 5 }
  0x12   : > { %p1766_p11 = por %p86_p7, %p56_p0  ;;  %p1770_p12 = por %p92_p8, %p62_p3 }
  0x13   : > { %p1774_p13 = pnand %p1361_p9, %p99_p10  ;;  %s1653_s28 = smov [#allocation4]  }
  0x14   : > { %s2616_s25 = scalar_select %p1766_p11, 1, 0 }
  0x15   : > { %s2617_s26 = scalar_select %p1770_p12, 1, 0 }
  0x16   : > { %s2618_s27 = scalar_select %p1774_p13, 1, 0 }
  0x17   : > { %p1390_p1 = pneg %p1774_p13  ;;  %s112_s29 = sshll.u32 %s1653_s28, 4  ;;  %s113_s29 = int_to_ptr.vmem [resolvable:$true] %s112_s29 }
  0x18   : > { %p1403_p2 = scmp.lt.s32.totalorder %s1651_s17, 4  ;;  %s123_s4 = sand.u32 1, %s1647_s16  }
  0x19   : > { %p1783_p0 = pnand %p1390_p1, %p2609_p4  ;;  %s1364_s6 = sshll.u32 %s123_s4, 6 }
  0x1a   : > { %p1790_p3 = pnand %p1403_p2, %p1753_p5  ;;  %s1523_s9 = scalar_lea.hbm %s2606_s1, 128 }
  0x1b   : > { %p1524_p7 = scmp.ne.s32.totalorder %s2606_s1, %s1523_s9  ;;  %p1525_p8 = pneg %p1783_p0 }
  0x1c   : > { %s2620_s5 = scalar_select %p1790_p3, 1, 0 }
  0x1d   : > { %p1526_p9 = pnand %p1525_p8, %p1524_p7  ;;  %p1530_p5 = scmp.lt.u32.totalorder %s1523_s9, %s2606_s1 }
  0x1f   : > { %p1527_p10 = pneg %p1526_p9 }
  0x21   : > { %p1532_p1 = pnand %p1530_p5, %p1527_p10 }
  0x23   : > { %1535 = shalt.err (!%p1532_p1)
}
  0x24   : > { %s1536_s18 = scalar_lea.vmem %s113_s29, 128  ;;  %p1544_p11 = scmp.lt.s32.totalorder %s113_s29, %s113_s29 }
  0x25   : > { %p1537_p2 = scmp.ne.s32.totalorder %s113_s29, %s1536_s18  ;;  %p1545_p6 = scmp.lt.s32.totalorder %s1536_s18, %s1536_s18 }
  0x27   : > { %p1539_p4 = pnand %p1537_p2, %p1525_p8  ;;  %p1546_p13 = por %p1545_p6, %p1544_p11 }
  0x29   : > { %p1540_p12 = pneg %p1539_p4 }
  0x2b   : > { %p1547_p3 = pnand %p1546_p13, %p1540_p12 }
  0x2d   : > { %1550 = shalt.err (!%p1547_p3)
}
  0x2e   : > { %1393 = dma.hbm_to_vmem [thread:$0]  (!%p1783_p0), %s2606_s1, 128, %s113_s29, [#allocation5]  }
  0x2f   : > { %s1380_s23 = sshll.u32 %s1651_s17, 8  ;;  %s127_s28 = scalar_lea.vmem [#allocation7], %s1364_s6 }
  0x30   : > { %s134_s7 = sshll.u32 %s127_s28, 4  ;;  %s1814_s10 = scalar_lea.hbm %s2607_s2, %s1380_s23  ;;  %s1816_s7 = int_to_ptr.vmem [resolvable:$true] %s134_s7 }
  0x31   : > { %s1818_s30 = scalar_lea.sflag [#allocation8], %s123_s4  ;;  %s1551_s11 = scalar_lea.hbm %s1814_s10, 1024 }
  0x32   : > { %p1552_p4 = scmp.ne.s32.totalorder %s1814_s10, %s1551_s11  ;;  %p2621_p6 = scmp.ne.s32.totalorder %s2620_s5, 0 }
  0x33   : > { %s1556_s12 = scalar_lea.hbm %s2607_s2, 4096  ;;  %p1557_p0 = scmp.lt.u32.totalorder %s1814_s10, %s2607_s2 }
  0x34   : > { %p1553_p11 = pneg %p2621_p6  ;;  %p1558_p3 = scmp.lt.u32.totalorder %s1556_s12, %s1551_s11 }
  0x35   : > { %p1560_p8 = scmp.lt.u32.totalorder %s1551_s11, %s1814_s10 }
  0x36   : > { %p1554_p12 = pnand %p1553_p11, %p1552_p4  ;;  %p1559_p7 = por %p1558_p3, %p1557_p0 }
  0x38   : > { %p1555_p13 = pneg %p1554_p12  ;;  %p1561_p9 = por %p1560_p8, %p1559_p7 }
  0x3a   : > { %p1562_p10 = pnand %p1561_p9, %p1555_p13 }
  0x3c   : > { %1565 = shalt.err (!%p1562_p10)
}
  0x3d   : > { %s1566_s4 = scalar_lea.vmem %s1816_s7, 1024  ;;  %s1654_s20 = smov [#allocation7]  }
  0x3e   : > { %p1567_p5 = scmp.ne.s32.totalorder %s1816_s7, %s1566_s4  ;;  %s1571_s21 = sshll.u32 %s1654_s20, 4  ;;  %s1572_s21 = int_to_ptr.vmem [resolvable:$false] %s1571_s21 }
  0x3f   : > { %s1573_s23 = scalar_lea.vmem %s1572_s21, 2048  ;;  %p1574_p4 = scmp.lt.s32.totalorder %s1816_s7, %s1572_s21 }
  0x40   : > { %p1569_p1 = pnand %p1567_p5, %p1553_p11  ;;  %p1575_p12 = scmp.lt.s32.totalorder %s1573_s23, %s1566_s4 }
  0x42   : > { %p1570_p2 = pneg %p1569_p1  ;;  %p1576_p0 = por %p1575_p12, %p1574_p4 }
  0x44   : > { %p1577_p3 = pnand %p1576_p0, %p1570_p2 }
  0x46   : > { %1580 = shalt.err (!%p1577_p3)
}
  0x47   : > { %s1655_s28 = smov 1024   ;;  %s1656_s8 = smov 256  }
  0x48   : > { %s1657_s9 = smov 16   ;;  %p2622_p11 = scmp.ne.s32.totalorder %s2618_s27, 0 }
  0x49   : > { %1397 = dma.hbm_to_vmem [thread:$0]  (!%p2621_p6), %s1814_s10, 1024, %s1816_s7, %s1818_s30, %s1655_s28, %s1656_s8, %s1657_s9  }
  0x4a   : > { %146 = sbr.rel (%p2622_p11) target bundleno = 385 (0x181), region = 28  ;;  %p2623_p13 = scmp.eq.s32.totalorder (!%p2622_p11), %s1735_s0, 0 }
  0x51   : > { %1626 = dma.done.wait (%p2623_p13), [#allocation5], 128   ;;  %p2624_p7 = pmov %p2623_p13 }
  0x52   : > { %s1853_s11 = sand.u32 1, %s1643_s15   ;;  %p2625_p6 = scmp.ne.s32.totalorder %s2615_s24, 0 }
  0x53   : > { %1628 = vsyncadd (%p2624_p7), [#allocation5], 4294967168  ;;  %s1369_s29 = sshll.u32 %s1853_s11, 6  ;;  %s153_s6 = scalar_lea.sflag [#allocation8], %s1853_s11 }
  0x54   : > { %s1857_s12 = scalar_lea.vmem [#allocation7], %s1369_s29 }
  0x55   : > { %1630 = dma.done.wait (%p2625_p6), %s153_s6, 1024  }
  0x56   : > { %1632 = vsyncadd (%p2625_p6), %s153_s6, 4294966272  ;;  %v1658_v0 = vmov 2   ;;  %v1659_v1 = vmov 0   ;;  %v1863_v2 = vld [vmem:[#allocation4] sm:$0xff]  ;;  %v1660_v3 = vmov 3   ;;  %v1661_v4 = vmov 1  }
  0x57   : > { %1476 = vset.pattern.permute.xlu1 %v1658_v0  ;;  %1474 = vset.pattern.permute.xlu0 %v1659_v1  ;;  %v1662_v5 = vmov 4   ;;  %v1663_v6 = vmov 5   ;;  %v1664_v7 = vmov 6   ;;  %v1665_v8 = vmov 8   ;;  %v180_v34 = vld [vmem:[%s1857_s12] sm:$0xff]  ;;  %v181_v36 = vld [vmem:[%s1857_s12 + $0x8] sm:$0xff] }
  0x58   : > { %270 = vperm.xlu1 %1476, %v1863_v2   ;;  %206 = vperm.xlu0 %1474, %v1863_v2   ;;  %v1666_v9 = vmov 7   ;;  %v1667_v10 = vmov 11   ;;  %v1668_v11 = vmov 9   ;;  %v1669_v12 = vmov 14   ;;  %v182_v59 = vld [vmem:[%s1857_s12 + $0x10] sm:$0xff]  ;;  %v183_v0 = vld [vmem:[%s1857_s12 + $0x18] sm:$0xff] }
  0x59   : > { %v1670_v13 = vmov 10   ;;  %v1671_v14 = vmov 17   ;;  %v1672_v15 = vmov 12   ;;  %v1673_v16 = vmov 20   ;;  %s1229_s24 = sld [smem:[#allocation3]]  ;;  %s1370_s27 = sshll.u32 %s1853_s11, 5 }
  0x5a   : > { %v1674_v17 = vmov 13   ;;  %v1675_v18 = vmov 23   ;;  %v1676_v19 = vmov 15   ;;  %v1677_v20 = vmov 26   ;;  %s1381_s5 = sshll.u32 %s1735_s0, 9  ;;  %s176_s7 = scalar_lea.vmem [#allocation9], %s1370_s27 }
  0x5b   : > { %v1678_v21 = vmov 16   ;;  %v1679_v22 = vmov 29   ;;  %v1680_v23 = vmov 18   ;;  %v1681_v24 = vmov 31   ;;  %s1278_s10 = sshll.u32 %s176_s7, 4  ;;  %s2562_s18 = scalar_lea.hbm %s2608_s3, %s1381_s5  ;;  %s2564_s10 = int_to_ptr.vmem [resolvable:$true] %s1278_s10 }
  0x5c   : > { %1477 = vset.pattern.permute.xlu1 %v1660_v3  ;;  %1475 = vset.pattern.permute.xlu0 %v1661_v4  ;;  %v1682_v25 = vmov 19   ;;  %v1683_v26 = vmov 21   ;;  %v1684_v27 = vmov 22   ;;  %v1685_v28 = vmov 24   ;;  %s1264_s0 = scalar_lea.sflag [#allocation6], %s1853_s11  ;;  %s1581_s4 = scalar_lea.vmem %s2564_s10, 512 }
  0x5d   : > { %302 = vperm.xlu1 %1477, %v1863_v2   ;;  %238 = vperm.xlu0 %1475, %v1863_v2   ;;  %v1686_v29 = vmov 25   ;;  %v1687_v30 = vmov 27   ;;  %v209_v31 = vlaneseq  ;;  %v1688_v32 = vmov 28   ;;  %p1582_p8 = scmp.ne.s32.totalorder %s2564_s10, %s1581_s4  ;;  %p2702_p9 = scmp.ne.s32.totalorder %s2616_s25, 0 }
  0x5e   : > { %v1689_v35 = vmov 30   ;;  %v1898_v37 = vunpack.c.l.bf16 %v180_v34  ;;  %v1900_v38 = vunpack.c.h.bf16 %v180_v34  ;;  %v1904_v40 = vunpack.c.l.bf16 %v181_v36  ;;  %s1690_s20 = smov [#allocation9]  }
  0x5f   : > { %v210_v33 = vshrl.u32 %v209_v31, 7  ;;  %v1906_v41 = vunpack.c.h.bf16 %v181_v36  ;;  %p1583_p10 = pnand %p1582_p8, %p2702_p9  ;;  %s1585_s21 = sshll.u32 %s1690_s20, 4  ;;  %s1586_s21 = int_to_ptr.vmem [resolvable:$false] %s1585_s21 }
  0x60   : > { %s1587_s23 = scalar_lea.vmem %s1586_s21, 1024  ;;  %p1588_p1 = scmp.lt.s32.totalorder %s2564_s10, %s1586_s21 }
  0x61   : > { %1478 = vset.pattern.permute.xlu1 %v1662_v5  ;;  %1479 = vset.pattern.permute.xlu0 %v1663_v6  ;;  %v1902_v39 = vsub.s32 2, %v210_v33  ;;  %v1908_v42 = vsub.s32 0, %v210_v33  ;;  %v1910_v43 = vsub.s32 3, %v210_v33  ;;  %v1917_v46 = vsub.s32 1, %v210_v33  ;;  %p1584_p5 = pneg %p1583_p10  ;;  %p1589_p2 = scmp.lt.s32.totalorder %s1587_s23, %s1581_s4 }
  0x62   : > { %334 = vperm.xlu1 %1478, %v1863_v2   ;;  %366 = vperm.xlu0 %1479, %v1863_v2   ;;  %v1925_v50 = vsub.s32 4, %v210_v33  ;;  %v1941_v58 = vsub.s32 5, %v210_v33  ;;  %v1950_v63 = vsub.s32 6, %v210_v33  ;;  %v1959_v4 = vsub.s32 7, %v210_v33  ;;  %v184_v33 = vld [vmem:[%s1857_s12 + $0x20] sm:$0xff] }
  0x63   : > { %v276_v44 = vrot.slane %v1898_v37, %v1902_v39  ;;  %v280_v45 = vrot.slane %v1900_v38, %v1902_v39  ;;  %v284_v47 = vrot.slane %v1904_v40, %v1902_v39  ;;  %v288_v48 = vrot.slane %v1906_v41, %v1902_v39  ;;  %p1590_p4 = por %p1589_p2, %p1588_p1 }
  0x64   : > { %v212_v49 = vrot.slane %v1898_v37, %v1908_v42  ;;  %v216_v51 = vrot.slane %v1900_v38, %v1908_v42  ;;  %v220_v52 = vrot.slane %v1904_v40, %v1908_v42  ;;  %v224_v53 = vrot.slane %v1906_v41, %v1908_v42 }
  0x65   : > { %v308_v54 = vrot.slane %v1898_v37, %v1910_v43  ;;  %v312_v55 = vrot.slane %v1900_v38, %v1910_v43  ;;  %v316_v56 = vrot.slane %v1904_v40, %v1910_v43  ;;  %v320_v57 = vrot.slane %v1906_v41, %v1910_v43  ;;  %p1591_p12 = pnand %p1590_p4, %p1584_p5 }
  0x66   : > { %1480 = vset.pattern.permute.xlu1 %v1664_v7  ;;  %1482 = vset.pattern.permute.xlu0 %v1665_v8  ;;  %v244_v60 = vrot.slane %v1898_v37, %v1917_v46  ;;  %v248_v61 = vrot.slane %v1900_v38, %v1917_v46  ;;  %v252_v62 = vrot.slane %v1904_v40, %v1917_v46  ;;  %v1965_v7 = vunpack.c.l.bf16 %v182_v59 }
  0x67   : > { %398 = vperm.xlu1 %1480, %v1863_v2   ;;  %462 = vperm.xlu0 %1482, %v1863_v2   ;;  %v256_v1 = vrot.slane %v1906_v41, %v1917_v46  ;;  %v344_v3 = vrot.slane %v1900_v38, %v1925_v50  ;;  %v348_v5 = vrot.slane %v1904_v40, %v1925_v50  ;;  %v1967_v8 = vunpack.c.h.bf16 %v182_v59 }
  0x68   : > { %v352_v6 = vrot.slane %v1906_v41, %v1925_v50  ;;  %v2039_v59 = vunpack.c.l.bf16 %v184_v33 }
  0x6b   : > { %1481 = vset.pattern.permute.xlu1 %v1666_v9  ;;  %1485 = vset.pattern.permute.xlu0 %v1667_v10  ;;  %v372_v9 = vrot.slane %v1898_v37, %v1941_v58  ;;  %v376_v10 = vrot.slane %v1900_v38, %v1941_v58 }
  0x6c   : > { %430 = vperm.xlu1 %1481, %v1863_v2   ;;  %558 = vperm.xlu0 %1485, %v1863_v2  }
  0x70   : > { %1483 = vset.pattern.permute.xlu1 %v1668_v11  ;;  %1488 = vset.pattern.permute.xlu0 %v1669_v12  ;;  %v1973_v11 = vunpack.c.l.bf16 %v183_v0  ;;  %v1975_v12 = vunpack.c.h.bf16 %v183_v0  ;;  %v185_v0 = vld [vmem:[%s1857_s12 + $0x28] sm:$0xff] }
  0x71   : > { %494 = vperm.xlu1 %1483, %v1863_v2   ;;  %654 = vperm.xlu0 %1488, %v1863_v2  }
  0x75   : > { %1484 = vset.pattern.permute.xlu1 %v1670_v13  ;;  %1491 = vset.pattern.permute.xlu0 %v1671_v14  ;;  %v380_v13 = vrot.slane %v1904_v40, %v1941_v58  ;;  %v384_v14 = vrot.slane %v1906_v41, %v1941_v58 }
  0x76   : > { %526 = vperm.xlu1 %1484, %v1863_v2   ;;  %750 = vperm.xlu0 %1491, %v1863_v2  }
  0x7a   : > { %1486 = vset.pattern.permute.xlu1 %v1672_v15  ;;  %1494 = vset.pattern.permute.xlu0 %v1673_v16  ;;  %v404_v15 = vrot.slane %v1898_v37, %v1950_v63 }
  0x7b   : > { %590 = vperm.xlu1 %1486, %v1863_v2   ;;  %846 = vperm.xlu0 %1494, %v1863_v2  }
  0x7f   : > { %1487 = vset.pattern.permute.xlu1 %v1674_v17  ;;  %1497 = vset.pattern.permute.xlu0 %v1675_v18 }
  0x80   : > { %622 = vperm.xlu1 %1487, %v1863_v2   ;;  %942 = vperm.xlu0 %1497, %v1863_v2  }
  0x84   : > { %1489 = vset.pattern.permute.xlu1 %v1676_v19  ;;  %1500 = vset.pattern.permute.xlu0 %v1677_v20 }
  0x85   : > { %686 = vperm.xlu1 %1489, %v1863_v2   ;;  %1038 = vperm.xlu0 %1500, %v1863_v2  }
  0x89   : > { %1490 = vset.pattern.permute.xlu1 %v1678_v21  ;;  %1503 = vset.pattern.permute.xlu0 %v1679_v22 }
  0x8a   : > { %718 = vperm.xlu1 %1490, %v1863_v2   ;;  %1134 = vperm.xlu0 %1503, %v1863_v2  }
  0x8e   : > { %1492 = vset.pattern.permute.xlu1 %v1680_v23  ;;  %1506 = vset.pattern.permute.xlu0 %v1681_v24 }
  0x8f   : > { %782 = vperm.xlu1 %1492, %v1863_v2  }
  0x93   : > { %1493 = vset.pattern.permute.xlu1 %v1682_v25 }
  0x94   : > { %814 = vperm.xlu1 %1493, %v1863_v2  }
  0x98   : > { %1495 = vset.pattern.permute.xlu1 %v1683_v26 }
  0x99   : > { %878 = vperm.xlu1 %1495, %v1863_v2  }
  0x9d   : > { %1496 = vset.pattern.permute.xlu1 %v1684_v27  ;;  %v186_v27 = vld [vmem:[%s1857_s12 + $0x30] sm:$0xff] }
  0x9e   : > { %910 = vperm.xlu1 %1496, %v1863_v2   ;;  %v2129_v34 = vunpack.c.l.bf16 %v186_v27  ;;  %v2131_v25 = vunpack.c.h.bf16 %v186_v27 }
  0xa2   : > { %1498 = vset.pattern.permute.xlu1 %v1685_v28  ;;  %v2049_v28 = vunpack.c.h.bf16 %v185_v0 }
  0xa3   : > { %974 = vperm.xlu1 %1498, %v1863_v2  }
  0xa7   : > { %1499 = vset.pattern.permute.xlu1 %v1686_v29  ;;  %v2041_v29 = vunpack.c.h.bf16 %v184_v33 }
  0xa8   : > { %1006 = vperm.xlu1 %1499, %v1863_v2  }
  0xac   : > { %1501 = vset.pattern.permute.xlu1 %v1687_v30  ;;  %v2047_v30 = vunpack.c.l.bf16 %v185_v0 }
  0xad   : > { %1070 = vperm.xlu1 %1501, %v1863_v2  }
  0xb1   : > { %1502 = vset.pattern.permute.xlu1 %v1688_v32  ;;  %v187_v32 = vld [vmem:[%s1857_s12 + $0x38] sm:$0xff] }
  0xb2   : > { %1102 = vperm.xlu1 %1502, %v1863_v2   ;;  %v2139_v23 = vunpack.c.l.bf16 %v187_v32  ;;  %v2164_v22 = vunpack.c.h.bf16 %v187_v32 }
  0xb6   : > { %1504 = vset.pattern.permute.xlu1 %v1689_v35 }
  0xb7   : > { %1166 = vperm.xlu1 %1504, %v1863_v2  }
  0xbb   : > { %1505 = vset.pattern.permute.xlu1 %v1681_v24 }
  0xbc   : > { %1198 = vperm.xlu1 %1505, %v1863_v2   ;;  %v340_v2 = vrot.slane %v1898_v37, %v1925_v50 }
  0xd7   : > { %v271_v31 = vpop.permute.xlu1 %270  ;;  %v207_v24 = vpop.permute.xlu0 %206 }
  0xd8   : > { %v289_v33 = vsub.f32 %v271_v31, %v276_v44  ;;  %v290_v27 = vsub.f32 %v271_v31, %v280_v45  ;;  %v291_v36 = vsub.f32 %v271_v31, %v284_v47  ;;  %v292_v26 = vsub.f32 %v271_v31, %v288_v48 }
  0xd9   : > { %v225_v35 = vsub.f32 %v207_v24, %v212_v49  ;;  %v226_v44 = vsub.f32 %v207_v24, %v216_v51  ;;  %v227_v45 = vsub.f32 %v207_v24, %v220_v52  ;;  %v228_v51 = vsub.f32 %v207_v24, %v224_v53 }
  0xda   : > { %v293_v47 = vand.u32 2147483647, %v289_v33  ;;  %v294_v31 = vand.u32 2147483647, %v290_v27  ;;  %v295_v21 = vand.u32 2147483647, %v291_v36 }
  0xdb   : > { %v296_v20 = vand.u32 2147483647, %v292_v26  ;;  %v229_v52 = vand.u32 2147483647, %v225_v35  ;;  %v230_v19 = vand.u32 2147483647, %v226_v44 }
  0xdc   : > { %v231_v18 = vand.u32 2147483647, %v227_v45  ;;  %v303_v0 = vpop.permute.xlu1 %302  ;;  %v239_v33 = vpop.permute.xlu0 %238  ;;  %v232_v36 = vand.u32 2147483647, %v228_v51 }
  0xdd   : > { %v321_v48 = vsub.f32 %v303_v0, %v308_v54  ;;  %v322_v26 = vsub.f32 %v303_v0, %v312_v55  ;;  %v323_v53 = vsub.f32 %v303_v0, %v316_v56  ;;  %v324_v24 = vsub.f32 %v303_v0, %v320_v57 }
  0xde   : > { %v257_v35 = vsub.f32 %v239_v33, %v244_v60  ;;  %v258_v54 = vsub.f32 %v239_v33, %v248_v61  ;;  %v259_v55 = vsub.f32 %v239_v33, %v252_v62  ;;  %v260_v56 = vsub.f32 %v239_v33, %v256_v1 }
  0xdf   : > { %v325_v27 = vand.u32 2147483647, %v321_v48  ;;  %v326_v44 = vand.u32 2147483647, %v322_v26  ;;  %v992_v57 = vrot.slane %v2164_v22, %v1908_v42  ;;  %v327_v0 = vand.u32 2147483647, %v323_v53 }
  0xe0   : > { %v261_v60 = vand.u32 2147483647, %v257_v35  ;;  %v262_v45 = vand.u32 2147483647, %v258_v54  ;;  %v1012_v61 = vrot.slane %v2129_v34, %v1917_v46  ;;  %v328_v32 = vand.u32 2147483647, %v324_v24 }
  0xe1   : > { %v263_v49 = vand.u32 2147483647, %v259_v55  ;;  %v264_v17 = vand.u32 2147483647, %v260_v56  ;;  %v335_v62 = vpop.permute.xlu1 %334 }
  0xe2   : > { %v265_v1 = vadd.f32 %v261_v60, %v229_v52  ;;  %v266_v51 = vadd.f32 %v262_v45, %v230_v19  ;;  %v353_v48 = vsub.f32 %v335_v62, %v340_v2  ;;  %v354_v33 = vsub.f32 %v335_v62, %v344_v3  ;;  %v367_v52 = vpop.permute.xlu0 %366 }
  0xe3   : > { %v267_v26 = vadd.f32 %v263_v49, %v231_v18  ;;  %v268_v53 = vadd.f32 %v264_v17, %v232_v36  ;;  %v355_v24 = vsub.f32 %v335_v62, %v348_v5  ;;  %v356_v35 = vsub.f32 %v335_v62, %v352_v6 }
  0xe4   : > { %v297_v19 = vadd.f32 %v293_v47, %v265_v1  ;;  %v298_v54 = vadd.f32 %v294_v31, %v266_v51  ;;  %v357_v55 = vand.u32 2147483647, %v353_v48  ;;  %v358_v56 = vand.u32 2147483647, %v354_v33 }
  0xe5   : > { %v299_v2 = vadd.f32 %v295_v21, %v267_v26  ;;  %v300_v60 = vadd.f32 %v296_v20, %v268_v53  ;;  %v359_v45 = vand.u32 2147483647, %v355_v24  ;;  %v360_v16 = vand.u32 2147483647, %v356_v35 }
  0xe6   : > { %v329_v3 = vadd.f32 %v325_v27, %v297_v19  ;;  %v330_v18 = vadd.f32 %v326_v44, %v298_v54  ;;  %v385_v17 = vsub.f32 %v367_v52, %v372_v9  ;;  %v386_v5 = vsub.f32 %v367_v52, %v376_v10  ;;  %v399_v6 = vpop.permute.xlu1 %398 }
  0xe7   : > { %v331_v49 = vadd.f32 %v327_v0, %v299_v2  ;;  %v332_v47 = vadd.f32 %v328_v32, %v300_v60  ;;  %v387_v21 = vsub.f32 %v367_v52, %v380_v13  ;;  %v388_v20 = vsub.f32 %v367_v52, %v384_v14 }
  0xe8   : > { %v361_v31 = vadd.f32 %v357_v55, %v329_v3  ;;  %v362_v36 = vadd.f32 %v358_v56, %v330_v18  ;;  %v389_v27 = vand.u32 2147483647, %v385_v17  ;;  %v390_v44 = vand.u32 2147483647, %v386_v5  ;;  %v463_v5 = vpop.permute.xlu0 %462 }
  0xe9   : > { %v363_v9 = vadd.f32 %v359_v45, %v331_v49  ;;  %v364_v62 = vadd.f32 %v360_v16, %v332_v47  ;;  %v391_v1 = vand.u32 2147483647, %v387_v21  ;;  %v392_v51 = vand.u32 2147483647, %v388_v20 }
  0xea   : > { %v393_v10 = vadd.f32 %v389_v27, %v361_v31  ;;  %v394_v48 = vadd.f32 %v390_v44, %v362_v36  ;;  %v417_v32 = vsub.f32 %v399_v6, %v404_v15  ;;  %v2626_v13 = vrot.slane %v1900_v38, %v1950_v63 }
  0xeb   : > { %v395_v33 = vadd.f32 %v391_v1, %v363_v9  ;;  %v396_v14 = vadd.f32 %v392_v51, %v364_v62  ;;  %v2627_v26 = vrot.slane %v1904_v40, %v1950_v63  ;;  %v2628_v16 = vrot.slane %v1906_v41, %v1950_v63  ;;  %v431_v35 = vpop.permute.xlu1 %430 }
  0xec   : > { %v418_v0 = vsub.f32 %v399_v6, %v2626_v13  ;;  %v421_v52 = vand.u32 2147483647, %v417_v32  ;;  %v2629_v15 = vrot.slane %v1898_v37, %v1959_v4  ;;  %v2630_v55 = vrot.slane %v1900_v38, %v1959_v4 }
  0xed   : > { %v419_v53 = vsub.f32 %v399_v6, %v2627_v26  ;;  %v420_v24 = vsub.f32 %v399_v6, %v2628_v16  ;;  %v2631_v45 = vrot.slane %v1904_v40, %v1959_v4  ;;  %v2632_v18 = vrot.slane %v1906_v41, %v1959_v4 }
  0xee   : > { %v422_v19 = vand.u32 2147483647, %v418_v0  ;;  %v449_v54 = vsub.f32 %v431_v35, %v2629_v15  ;;  %v450_v56 = vsub.f32 %v431_v35, %v2630_v55  ;;  %v425_v6 = vadd.f32 %v421_v52, %v393_v10 }
  0xef   : > { %v423_v2 = vand.u32 2147483647, %v419_v53  ;;  %v424_v60 = vand.u32 2147483647, %v420_v24  ;;  %v451_v3 = vsub.f32 %v431_v35, %v2631_v45  ;;  %v452_v17 = vsub.f32 %v431_v35, %v2632_v18 }
  0xf0   : > { %v426_v49 = vadd.f32 %v422_v19, %v394_v48  ;;  %v453_v47 = vand.u32 2147483647, %v449_v54  ;;  %v454_v37 = vand.u32 2147483647, %v450_v56  ;;  %v2633_v44 = vrot.slane %v1965_v7, %v1908_v42  ;;  %v495_v62 = vpop.permute.xlu1 %494 }
  0xf1   : > { %v427_v21 = vadd.f32 %v423_v2, %v395_v33  ;;  %v428_v20 = vadd.f32 %v424_v60, %v396_v14  ;;  %v455_v31 = vand.u32 2147483647, %v451_v3  ;;  %v456_v38 = vand.u32 2147483647, %v452_v17 }
  0xf2   : > { %v457_v36 = vadd.f32 %v453_v47, %v425_v6  ;;  %v458_v27 = vadd.f32 %v454_v37, %v426_v49  ;;  %v481_v40 = vsub.f32 %v463_v5, %v2633_v44  ;;  %v2634_v9 = vrot.slane %v1967_v8, %v1908_v42  ;;  %v559_v6 = vpop.permute.xlu0 %558 }
  0xf3   : > { %v459_v1 = vadd.f32 %v455_v31, %v427_v21  ;;  %v460_v51 = vadd.f32 %v456_v38, %v428_v20  ;;  %v2635_v10 = vrot.slane %v1973_v11, %v1908_v42  ;;  %v2636_v32 = vrot.slane %v1975_v12, %v1908_v42 }
  0xf4   : > { %v482_v41 = vsub.f32 %v463_v5, %v2634_v9  ;;  %v485_v0 = vand.u32 2147483647, %v481_v40  ;;  %v2637_v14 = vrot.slane %v1965_v7, %v1917_v46  ;;  %v2638_v53 = vrot.slane %v1967_v8, %v1917_v46 }
  0xf5   : > { %v483_v48 = vsub.f32 %v463_v5, %v2635_v10  ;;  %v484_v13 = vsub.f32 %v463_v5, %v2636_v32  ;;  %v2639_v52 = vrot.slane %v1973_v11, %v1917_v46  ;;  %v2640_v15 = vrot.slane %v1975_v12, %v1917_v46  ;;  %v527_v5 = vpop.permute.xlu1 %526 }
  0xf6   : > { %v486_v33 = vand.u32 2147483647, %v482_v41  ;;  %v513_v26 = vsub.f32 %v495_v62, %v2637_v14  ;;  %v514_v16 = vsub.f32 %v495_v62, %v2638_v53  ;;  %v489_v55 = vadd.f32 %v485_v0, %v457_v36 }
  0xf7   : > { %v487_v24 = vand.u32 2147483647, %v483_v48  ;;  %v488_v35 = vand.u32 2147483647, %v484_v13  ;;  %v515_v19 = vsub.f32 %v495_v62, %v2639_v52  ;;  %v516_v54 = vsub.f32 %v495_v62, %v2640_v15 }
  0xf8   : > { %v490_v56 = vadd.f32 %v486_v33, %v458_v27  ;;  %v517_v2 = vand.u32 2147483647, %v513_v26  ;;  %v518_v60 = vand.u32 2147483647, %v514_v16  ;;  %v2641_v37 = vrot.slane %v1965_v7, %v1902_v39 }
  0xf9   : > { %v491_v45 = vadd.f32 %v487_v24, %v459_v1  ;;  %v492_v3 = vadd.f32 %v488_v35, %v460_v51  ;;  %v519_v18 = vand.u32 2147483647, %v515_v19  ;;  %v520_v17 = vand.u32 2147483647, %v516_v54 }
  0xfa   : > { %v521_v49 = vadd.f32 %v517_v2, %v489_v55  ;;  %v522_v47 = vadd.f32 %v518_v60, %v490_v56  ;;  %v545_v21 = vsub.f32 %v527_v5, %v2641_v37  ;;  %v2642_v20 = vrot.slane %v1967_v8, %v1902_v39  ;;  %v591_v52 = vpop.permute.xlu1 %590  ;;  %v655_v56 = vpop.permute.xlu0 %654 }
  0xfb   : > { %v523_v38 = vadd.f32 %v519_v18, %v491_v45  ;;  %v524_v36 = vadd.f32 %v520_v17, %v492_v3  ;;  %v2643_v27 = vrot.slane %v1973_v11, %v1902_v39  ;;  %v2644_v40 = vrot.slane %v1975_v12, %v1902_v39 }
  0xfc   : > { %v546_v31 = vsub.f32 %v527_v5, %v2642_v20  ;;  %v549_v41 = vand.u32 2147483647, %v545_v21  ;;  %v2645_v1 = vrot.slane %v1965_v7, %v1910_v43  ;;  %v2646_v10 = vrot.slane %v1967_v8, %v1910_v43 }
  0xfd   : > { %v547_v44 = vsub.f32 %v527_v5, %v2643_v27  ;;  %v548_v9 = vsub.f32 %v527_v5, %v2644_v40  ;;  %v2647_v0 = vrot.slane %v1973_v11, %v1910_v43  ;;  %v2648_v14 = vrot.slane %v1975_v12, %v1910_v43 }
  0xfe   : > { %v550_v62 = vand.u32 2147483647, %v546_v31  ;;  %v577_v51 = vsub.f32 %v559_v6, %v2645_v1  ;;  %v578_v48 = vsub.f32 %v559_v6, %v2646_v10  ;;  %v553_v53 = vadd.f32 %v549_v41, %v521_v49 }
  0xff   : > { %v551_v32 = vand.u32 2147483647, %v547_v44  ;;  %v552_v13 = vand.u32 2147483647, %v548_v9  ;;  %v579_v33 = vsub.f32 %v559_v6, %v2647_v0  ;;  %v580_v26 = vsub.f32 %v559_v6, %v2648_v14  ;;  %v623_v41 = vpop.permute.xlu1 %622 }
 0x100   : > { %v554_v16 = vadd.f32 %v550_v62, %v522_v47  ;;  %v581_v24 = vand.u32 2147483647, %v577_v51  ;;  %v582_v35 = vand.u32 2147483647, %v578_v48  ;;  %v2649_v2 = vrot.slane %v1965_v7, %v1925_v50 }
 0x101   : > { %v555_v19 = vadd.f32 %v551_v32, %v523_v38  ;;  %v556_v15 = vadd.f32 %v552_v13, %v524_v36  ;;  %v583_v54 = vand.u32 2147483647, %v579_v33  ;;  %v584_v55 = vand.u32 2147483647, %v580_v26 }
 0x102   : > { %v609_v60 = vsub.f32 %v591_v52, %v2649_v2  ;;  %v2650_v45 = vrot.slane %v1967_v8, %v1925_v50  ;;  %v1020_v18 = vrot.slane %v2139_v23, %v1917_v46  ;;  %v1024_v17 = vrot.slane %v2164_v22, %v1917_v46 }
 0x103   : > { %v585_v5 = vadd.f32 %v581_v24, %v553_v53  ;;  %v586_v6 = vadd.f32 %v582_v35, %v554_v16  ;;  %v2651_v49 = vrot.slane %v1973_v11, %v1925_v50  ;;  %v2652_v37 = vrot.slane %v1975_v12, %v1925_v50 }
 0x104   : > { %v610_v3 = vsub.f32 %v591_v52, %v2650_v45  ;;  %v587_v20 = vadd.f32 %v583_v54, %v555_v19  ;;  %v613_v31 = vand.u32 2147483647, %v609_v60  ;;  %v2653_v36 = vrot.slane %v1965_v7, %v1950_v63 }
 0x105   : > { %v611_v47 = vsub.f32 %v591_v52, %v2651_v49  ;;  %v612_v21 = vsub.f32 %v591_v52, %v2652_v37  ;;  %v588_v44 = vadd.f32 %v584_v55, %v556_v15  ;;  %v2654_v62 = vrot.slane %v1967_v8, %v1950_v63  ;;  %v751_v37 = vpop.permute.xlu0 %750 }
 0x106   : > { %v614_v38 = vand.u32 2147483647, %v610_v3  ;;  %v673_v27 = vsub.f32 %v655_v56, %v2653_v36  ;;  %v2655_v51 = vrot.slane %v1965_v7, %v1941_v58  ;;  %v2656_v48 = vrot.slane %v1967_v8, %v1941_v58 }
 0x107   : > { %v615_v40 = vand.u32 2147483647, %v611_v47  ;;  %v616_v9 = vand.u32 2147483647, %v612_v21  ;;  %v674_v1 = vsub.f32 %v655_v56, %v2654_v62  ;;  %v2657_v13 = vrot.slane %v1973_v11, %v1950_v63  ;;  %v687_v47 = vpop.permute.xlu1 %686 }
 0x108   : > { %v641_v10 = vsub.f32 %v623_v41, %v2655_v51  ;;  %v642_v32 = vsub.f32 %v623_v41, %v2656_v48  ;;  %v2658_v33 = vrot.slane %v1975_v12, %v1950_v63  ;;  %v617_v26 = vadd.f32 %v613_v31, %v585_v5 }
 0x109   : > { %v675_v0 = vsub.f32 %v655_v56, %v2657_v13  ;;  %v618_v53 = vadd.f32 %v614_v38, %v586_v6  ;;  %v2659_v16 = vrot.slane %v1973_v11, %v1941_v58  ;;  %v2660_v35 = vrot.slane %v1975_v12, %v1941_v58 }
 0x10a   : > { %v676_v14 = vsub.f32 %v655_v56, %v2658_v33  ;;  %v619_v19 = vadd.f32 %v615_v40, %v587_v20  ;;  %v645_v15 = vand.u32 2147483647, %v641_v10  ;;  %v646_v54 = vand.u32 2147483647, %v642_v32 }
 0x10b   : > { %v643_v24 = vsub.f32 %v623_v41, %v2659_v16  ;;  %v644_v52 = vsub.f32 %v623_v41, %v2660_v35  ;;  %v677_v55 = vand.u32 2147483647, %v673_v27  ;;  %v620_v2 = vadd.f32 %v616_v9, %v588_v44  ;;  %v719_v16 = vpop.permute.xlu1 %718 }
 0x10c   : > { %v678_v3 = vand.u32 2147483647, %v674_v1  ;;  %v649_v49 = vadd.f32 %v645_v15, %v617_v26  ;;  %v650_v56 = vadd.f32 %v646_v54, %v618_v53  ;;  %v679_v5 = vand.u32 2147483647, %v675_v0 }
 0x10d   : > { %v647_v60 = vand.u32 2147483647, %v643_v24  ;;  %v648_v45 = vand.u32 2147483647, %v644_v52  ;;  %v680_v6 = vand.u32 2147483647, %v676_v14  ;;  %v2661_v38 = vrot.slane %v1965_v7, %v1959_v4 }
 0x10e   : > { %v2662_v20 = vrot.slane %v1967_v8, %v1959_v4  ;;  %v2663_v44 = vrot.slane %v1973_v11, %v1959_v4  ;;  %v2664_v9 = vrot.slane %v1975_v12, %v1959_v4  ;;  %v1044_v62 = vrot.slane %v2129_v34, %v1902_v39 }
 0x10f   : > { %v651_v21 = vadd.f32 %v647_v60, %v619_v19  ;;  %v652_v31 = vadd.f32 %v648_v45, %v620_v2  ;;  %v705_v36 = vsub.f32 %v687_v47, %v2661_v38  ;;  %v1048_v1 = vrot.slane %v2131_v25, %v1902_v39 }
 0x110   : > { %v706_v27 = vsub.f32 %v687_v47, %v2662_v20  ;;  %v707_v40 = vsub.f32 %v687_v47, %v2663_v44  ;;  %v708_v41 = vsub.f32 %v687_v47, %v2664_v9  ;;  %v681_v7 = vadd.f32 %v677_v55, %v649_v49 }
 0x111   : > { %v709_v51 = vand.u32 2147483647, %v705_v36  ;;  %v2665_v8 = vrot.slane %v2039_v59, %v1917_v46  ;;  %v1052_v11 = vrot.slane %v2139_v23, %v1902_v39  ;;  %v682_v48 = vadd.f32 %v678_v3, %v650_v56 }
 0x112   : > { %v710_v32 = vand.u32 2147483647, %v706_v27  ;;  %v2666_v12 = vrot.slane %v2041_v29, %v1917_v46  ;;  %v1056_v0 = vrot.slane %v2164_v22, %v1902_v39  ;;  %v683_v33 = vadd.f32 %v679_v5, %v651_v21 }
 0x113   : > { %v769_v10 = vsub.f32 %v751_v37, %v2665_v8  ;;  %v684_v14 = vadd.f32 %v680_v6, %v652_v31  ;;  %v711_v26 = vand.u32 2147483647, %v707_v40  ;;  %v712_v53 = vand.u32 2147483647, %v708_v41  ;;  %v783_v41 = vpop.permute.xlu1 %782 }
 0x114   : > { %v770_v13 = vsub.f32 %v751_v37, %v2666_v12  ;;  %v2667_v24 = vrot.slane %v2039_v59, %v1908_v42  ;;  %v2668_v52 = vrot.slane %v2041_v29, %v1908_v42  ;;  %v2669_v15 = vrot.slane %v2047_v30, %v1917_v46 }
 0x115   : > { %v2670_v55 = vrot.slane %v2049_v28, %v1917_v46  ;;  %v713_v60 = vadd.f32 %v709_v51, %v681_v7  ;;  %v2671_v45 = vrot.slane %v2047_v30, %v1908_v42  ;;  %v2672_v49 = vrot.slane %v2049_v28, %v1908_v42  ;;  %v847_v7 = vpop.permute.xlu0 %846 }
 0x116   : > { %v737_v35 = vsub.f32 %v719_v16, %v2667_v24  ;;  %v738_v19 = vsub.f32 %v719_v16, %v2668_v52  ;;  %v771_v54 = vsub.f32 %v751_v37, %v2669_v15  ;;  %v773_v5 = vand.u32 2147483647, %v769_v10 }
 0x117   : > { %v772_v2 = vsub.f32 %v751_v37, %v2670_v55  ;;  %v739_v3 = vsub.f32 %v719_v16, %v2671_v45  ;;  %v740_v56 = vsub.f32 %v719_v16, %v2672_v49  ;;  %v714_v6 = vadd.f32 %v710_v32, %v682_v48 }
 0x118   : > { %v741_v47 = vand.u32 2147483647, %v737_v35  ;;  %v742_v21 = vand.u32 2147483647, %v738_v19  ;;  %v774_v31 = vand.u32 2147483647, %v770_v13  ;;  %v715_v38 = vadd.f32 %v711_v26, %v683_v33 }
 0x119   : > { %v716_v36 = vadd.f32 %v712_v53, %v684_v14  ;;  %v743_v20 = vand.u32 2147483647, %v739_v3  ;;  %v744_v27 = vand.u32 2147483647, %v740_v56  ;;  %v775_v40 = vand.u32 2147483647, %v771_v54 }
 0x11a   : > { %v745_v44 = vadd.f32 %v741_v47, %v713_v60  ;;  %v746_v37 = vadd.f32 %v742_v21, %v714_v6  ;;  %v776_v9 = vand.u32 2147483647, %v772_v2  ;;  %v2673_v12 = vrot.slane %v2039_v59, %v1902_v39  ;;  %v815_v47 = vpop.permute.xlu1 %814 }
 0x11b   : > { %v747_v51 = vadd.f32 %v743_v20, %v715_v38  ;;  %v748_v8 = vadd.f32 %v744_v27, %v716_v36  ;;  %v2674_v48 = vrot.slane %v2041_v29, %v1902_v39  ;;  %v2675_v13 = vrot.slane %v2047_v30, %v1902_v39 }
 0x11c   : > { %v801_v10 = vsub.f32 %v783_v41, %v2673_v12  ;;  %v2676_v14 = vrot.slane %v2049_v28, %v1902_v39  ;;  %v1076_v53 = vrot.slane %v2129_v34, %v1910_v43  ;;  %v1080_v16 = vrot.slane %v2131_v25, %v1910_v43 }
 0x11d   : > { %v802_v32 = vsub.f32 %v783_v41, %v2674_v48  ;;  %v803_v33 = vsub.f32 %v783_v41, %v2675_v13  ;;  %v2677_v24 = vrot.slane %v2039_v59, %v1925_v50  ;;  %v2678_v52 = vrot.slane %v2041_v29, %v1925_v50 }
 0x11e   : > { %v804_v26 = vsub.f32 %v783_v41, %v2676_v14  ;;  %v1084_v15 = vrot.slane %v2139_v23, %v1910_v43  ;;  %v1088_v54 = vrot.slane %v2164_v22, %v1910_v43  ;;  %v777_v55 = vadd.f32 %v773_v5, %v745_v44 }
 0x11f   : > { %v865_v35 = vsub.f32 %v847_v7, %v2677_v24  ;;  %v866_v19 = vsub.f32 %v847_v7, %v2678_v52  ;;  %v778_v2 = vadd.f32 %v774_v31, %v746_v37  ;;  %v805_v60 = vand.u32 2147483647, %v801_v10 }
 0x120   : > { %v806_v45 = vand.u32 2147483647, %v802_v32  ;;  %v779_v3 = vadd.f32 %v775_v40, %v747_v51  ;;  %v780_v49 = vadd.f32 %v776_v9, %v748_v8  ;;  %v807_v56 = vand.u32 2147483647, %v803_v33 }
 0x121   : > { %v808_v6 = vand.u32 2147483647, %v804_v26  ;;  %v2679_v21 = vrot.slane %v2039_v59, %v1910_v43  ;;  %v2680_v36 = vrot.slane %v2041_v29, %v1910_v43  ;;  %v2681_v27 = vrot.slane %v2047_v30, %v1925_v50 }
 0x122   : > { %v2682_v31 = vrot.slane %v2049_v28, %v1925_v50  ;;  %v2683_v37 = vrot.slane %v2047_v30, %v1910_v43  ;;  %v2684_v9 = vrot.slane %v2049_v28, %v1910_v43  ;;  %v869_v51 = vand.u32 2147483647, %v865_v35 }
 0x123   : > { %v833_v38 = vsub.f32 %v815_v47, %v2679_v21  ;;  %v834_v20 = vsub.f32 %v815_v47, %v2680_v36  ;;  %v867_v5 = vsub.f32 %v847_v7, %v2681_v27  ;;  %v870_v8 = vand.u32 2147483647, %v866_v19  ;;  %v879_v36 = vpop.permute.xlu1 %878  ;;  %v943_v27 = vpop.permute.xlu0 %942 }
 0x124   : > { %v868_v44 = vsub.f32 %v847_v7, %v2682_v31  ;;  %v835_v40 = vsub.f32 %v815_v47, %v2683_v37  ;;  %v836_v41 = vsub.f32 %v815_v47, %v2684_v9  ;;  %v809_v12 = vadd.f32 %v805_v60, %v777_v55 }
 0x125   : > { %v810_v10 = vadd.f32 %v806_v45, %v778_v2  ;;  %v837_v48 = vand.u32 2147483647, %v833_v38  ;;  %v838_v32 = vand.u32 2147483647, %v834_v20  ;;  %v811_v13 = vadd.f32 %v807_v56, %v779_v3 }
 0x126   : > { %v812_v33 = vadd.f32 %v808_v6, %v780_v49  ;;  %v839_v14 = vand.u32 2147483647, %v835_v40  ;;  %v840_v26 = vand.u32 2147483647, %v836_v41  ;;  %v871_v52 = vand.u32 2147483647, %v867_v5 }
 0x127   : > { %v841_v24 = vadd.f32 %v837_v48, %v809_v12  ;;  %v842_v7 = vadd.f32 %v838_v32, %v810_v10  ;;  %v872_v21 = vand.u32 2147483647, %v868_v44  ;;  %v2685_v35 = vrot.slane %v2039_v59, %v1941_v58 }
 0x128   : > { %v843_v31 = vadd.f32 %v839_v14, %v811_v13  ;;  %v844_v37 = vadd.f32 %v840_v26, %v812_v33  ;;  %v2686_v55 = vrot.slane %v2041_v29, %v1941_v58  ;;  %v2687_v60 = vrot.slane %v2047_v30, %v1941_v58  ;;  %v911_v14 = vpop.permute.xlu1 %910 }
 0x129   : > { %v897_v19 = vsub.f32 %v879_v36, %v2685_v35  ;;  %v2688_v3 = vrot.slane %v2049_v28, %v1941_v58  ;;  %v1108_v56 = vrot.slane %v2129_v34, %v1925_v50  ;;  %v1112_v6 = vrot.slane %v2131_v25, %v1925_v50 }
 0x12a   : > { %v898_v2 = vsub.f32 %v879_v36, %v2686_v55  ;;  %v899_v45 = vsub.f32 %v879_v36, %v2687_v60  ;;  %v2689_v47 = vrot.slane %v2039_v59, %v1959_v4  ;;  %v2690_v20 = vrot.slane %v2041_v29, %v1959_v4 }
 0x12b   : > { %v900_v49 = vsub.f32 %v879_v36, %v2688_v3  ;;  %v1116_v44 = vrot.slane %v2139_v23, %v1925_v50  ;;  %v873_v9 = vadd.f32 %v869_v51, %v841_v24  ;;  %v874_v41 = vadd.f32 %v870_v8, %v842_v7 }
 0x12c   : > { %v961_v38 = vsub.f32 %v943_v27, %v2689_v47  ;;  %v962_v5 = vsub.f32 %v943_v27, %v2690_v20  ;;  %v901_v12 = vand.u32 2147483647, %v897_v19  ;;  %v902_v10 = vand.u32 2147483647, %v898_v2 }
 0x12d   : > { %v875_v48 = vadd.f32 %v871_v52, %v843_v31  ;;  %v876_v32 = vadd.f32 %v872_v21, %v844_v37  ;;  %v903_v13 = vand.u32 2147483647, %v899_v45  ;;  %v904_v33 = vand.u32 2147483647, %v900_v49 }
 0x12e   : > { %v2691_v26 = vrot.slane %v2039_v59, %v1950_v63  ;;  %v2692_v35 = vrot.slane %v2041_v29, %v1950_v63  ;;  %v2693_v60 = vrot.slane %v2047_v30, %v1959_v4  ;;  %v2694_v8 = vrot.slane %v2049_v28, %v1959_v4 }
 0x12f   : > { %v2695_v7 = vrot.slane %v2047_v30, %v1950_v63  ;;  %v2696_v59 = vrot.slane %v2049_v28, %v1950_v63  ;;  %v965_v31 = vand.u32 2147483647, %v961_v38  ;;  %v966_v37 = vand.u32 2147483647, %v962_v5  ;;  %v975_v30 = vpop.permute.xlu1 %974 }
 0x130   : > { %v929_v36 = vsub.f32 %v911_v14, %v2691_v26  ;;  %v930_v55 = vsub.f32 %v911_v14, %v2692_v35  ;;  %v963_v51 = vsub.f32 %v943_v27, %v2693_v60  ;;  %v964_v24 = vsub.f32 %v943_v27, %v2694_v8  ;;  %v1039_v8 = vpop.permute.xlu0 %1038 }
 0x131   : > { %v931_v52 = vsub.f32 %v911_v14, %v2695_v7  ;;  %v932_v21 = vsub.f32 %v911_v14, %v2696_v59  ;;  %v905_v29 = vadd.f32 %v901_v12, %v873_v9  ;;  %v906_v19 = vadd.f32 %v902_v10, %v874_v41 }
 0x132   : > { %v933_v2 = vand.u32 2147483647, %v929_v36  ;;  %v934_v45 = vand.u32 2147483647, %v930_v55  ;;  %v907_v3 = vadd.f32 %v903_v13, %v875_v48  ;;  %v908_v49 = vadd.f32 %v904_v33, %v876_v32 }
 0x133   : > { %v935_v47 = vand.u32 2147483647, %v931_v52  ;;  %v936_v20 = vand.u32 2147483647, %v932_v21  ;;  %v967_v35 = vand.u32 2147483647, %v963_v51  ;;  %v2697_v28 = vrot.slane %v2129_v34, %v1908_v42 }
 0x134   : > { %v937_v26 = vadd.f32 %v933_v2, %v905_v29  ;;  %v938_v27 = vadd.f32 %v934_v45, %v906_v19  ;;  %v968_v60 = vand.u32 2147483647, %v964_v24  ;;  %v2698_v5 = vrot.slane %v2131_v25, %v1908_v42  ;;  %v1007_v29 = vpop.permute.xlu1 %1006 }
 0x135   : > { %v939_v7 = vadd.f32 %v935_v47, %v907_v3  ;;  %v940_v40 = vadd.f32 %v936_v20, %v908_v49  ;;  %v993_v38 = vsub.f32 %v975_v30, %v2697_v28  ;;  %v2699_v41 = vrot.slane %v2139_v23, %v1908_v42 }
 0x136   : > { %v994_v9 = vsub.f32 %v975_v30, %v2698_v5  ;;  %v996_v10 = vsub.f32 %v975_v30, %v992_v57  ;;  %v1140_v48 = vrot.slane %v2129_v34, %v1941_v58  ;;  %v1144_v32 = vrot.slane %v2131_v25, %v1941_v58 }
 0x137   : > { %v995_v12 = vsub.f32 %v975_v30, %v2699_v41  ;;  %v1057_v13 = vsub.f32 %v1039_v8, %v1044_v62  ;;  %v1058_v33 = vsub.f32 %v1039_v8, %v1048_v1  ;;  %v1148_v14 = vrot.slane %v2139_v23, %v1941_v58 }
 0x138   : > { %v1152_v42 = vrot.slane %v2164_v22, %v1941_v58  ;;  %v969_v57 = vadd.f32 %v965_v31, %v937_v26  ;;  %v970_v36 = vadd.f32 %v966_v37, %v938_v27  ;;  %v997_v55 = vand.u32 2147483647, %v993_v38  ;;  %v1071_v30 = vpop.permute.xlu1 %1070 }
 0x139   : > { %v998_v51 = vand.u32 2147483647, %v994_v9  ;;  %v971_v24 = vadd.f32 %v967_v35, %v939_v7  ;;  %v972_v52 = vadd.f32 %v968_v60, %v940_v40  ;;  %v999_v59 = vand.u32 2147483647, %v995_v12 }
 0x13a   : > { %v1000_v21 = vand.u32 2147483647, %v996_v10  ;;  %v1025_v62 = vsub.f32 %v1007_v29, %v1012_v61  ;;  %v2700_v1 = vrot.slane %v2131_v25, %v1917_v46  ;;  %v1059_v58 = vsub.f32 %v1039_v8, %v1052_v11 }
 0x13b   : > { %v1060_v31 = vsub.f32 %v1039_v8, %v1056_v0  ;;  %v1027_v40 = vsub.f32 %v1007_v29, %v1020_v18  ;;  %v1028_v61 = vsub.f32 %v1007_v29, %v1024_v17  ;;  %v1061_v37 = vand.u32 2147483647, %v1057_v13  ;;  %v1135_v18 = vpop.permute.xlu0 %1134 }
 0x13c   : > { %v1026_v19 = vsub.f32 %v1007_v29, %v2700_v1  ;;  %v1062_v2 = vand.u32 2147483647, %v1058_v33  ;;  %v1001_v45 = vadd.f32 %v997_v55, %v969_v57  ;;  %v1002_v3 = vadd.f32 %v998_v51, %v970_v36  ;;  %v1103_v55 = vpop.permute.xlu1 %1102 }
 0x13d   : > { %v1029_v49 = vand.u32 2147483647, %v1025_v62  ;;  %v1003_v20 = vadd.f32 %v999_v59, %v971_v24  ;;  %v1004_v11 = vadd.f32 %v1000_v21, %v972_v52  ;;  %v1031_v26 = vand.u32 2147483647, %v1027_v40 }
 0x13e   : > { %v1030_v47 = vand.u32 2147483647, %v1026_v19  ;;  %v1032_v27 = vand.u32 2147483647, %v1028_v61  ;;  %v1063_v35 = vand.u32 2147483647, %v1059_v58  ;;  %v1089_v46 = vsub.f32 %v1071_v30, %v1076_v53 }
 0x13f   : > { %v1033_v39 = vadd.f32 %v1029_v49, %v1001_v45  ;;  %v1064_v60 = vand.u32 2147483647, %v1060_v31  ;;  %v1035_v8 = vadd.f32 %v1031_v26, %v1003_v20  ;;  %v1090_v17 = vsub.f32 %v1071_v30, %v1080_v16 }
 0x140   : > { %v1034_v0 = vadd.f32 %v1030_v47, %v1002_v3  ;;  %v1036_v7 = vadd.f32 %v1032_v27, %v1004_v11  ;;  %v1091_v28 = vsub.f32 %v1071_v30, %v1084_v15  ;;  %v1092_v38 = vsub.f32 %v1071_v30, %v1088_v54 }
 0x141   : > { %v1172_v5 = vrot.slane %v2129_v34, %v1950_v63  ;;  %v1176_v9 = vrot.slane %v2131_v25, %v1950_v63  ;;  %v1153_v41 = vsub.f32 %v1135_v18, %v1140_v48  ;;  %v1154_v53 = vsub.f32 %v1135_v18, %v1144_v32 }
 0x142   : > { %v1180_v12 = vrot.slane %v2139_v23, %v1950_v63  ;;  %v1184_v16 = vrot.slane %v2164_v22, %v1950_v63  ;;  %v1065_v10 = vadd.f32 %v1061_v37, %v1033_v39  ;;  %v1066_v15 = vadd.f32 %v1062_v2, %v1034_v0 }
 0x143   : > { %v1093_v13 = vand.u32 2147483647, %v1089_v46  ;;  %v1094_v33 = vand.u32 2147483647, %v1090_v17  ;;  %v1067_v43 = vadd.f32 %v1063_v35, %v1035_v8  ;;  %v1068_v54 = vadd.f32 %v1064_v60, %v1036_v7 }
 0x144   : > { %v1095_v57 = vand.u32 2147483647, %v1091_v28  ;;  %v1096_v36 = vand.u32 2147483647, %v1092_v38  ;;  %v1121_v48 = vsub.f32 %v1103_v55, %v1108_v56  ;;  %v1122_v32 = vsub.f32 %v1103_v55, %v1112_v6 }
 0x145   : > { %v1155_v51 = vsub.f32 %v1135_v18, %v1148_v14  ;;  %v1156_v24 = vsub.f32 %v1135_v18, %v1152_v42  ;;  %v1123_v63 = vsub.f32 %v1103_v55, %v1116_v44  ;;  %v2701_v52 = vrot.slane %v2164_v22, %v1925_v50  ;;  %v1167_v44 = vpop.permute.xlu1 %1166 }
 0x146   : > { %v1157_v21 = vand.u32 2147483647, %v1153_v41  ;;  %v1158_v29 = vand.u32 2147483647, %v1154_v53  ;;  %v1097_v62 = vadd.f32 %v1093_v13, %v1065_v10  ;;  %v1098_v1 = vadd.f32 %v1094_v33, %v1066_v15 }
 0x147   : > { %v1124_v59 = vsub.f32 %v1103_v55, %v2701_v52  ;;  %v1125_v19 = vand.u32 2147483647, %v1121_v48  ;;  %v1126_v56 = vand.u32 2147483647, %v1122_v32  ;;  %v1099_v58 = vadd.f32 %v1095_v57, %v1067_v43 }
 0x148   : > { %v1100_v31 = vadd.f32 %v1096_v36, %v1068_v54  ;;  %v1127_v40 = vand.u32 2147483647, %v1123_v63  ;;  %v1159_v61 = vand.u32 2147483647, %v1155_v51  ;;  %v1160_v37 = vand.u32 2147483647, %v1156_v24 }
 0x149   : > { %v1128_v6 = vand.u32 2147483647, %v1124_v59  ;;  %v1129_v14 = vadd.f32 %v1125_v19, %v1097_v62  ;;  %v1130_v42 = vadd.f32 %v1126_v56, %v1098_v1  ;;  %v1185_v50 = vsub.f32 %v1167_v44, %v1172_v5  ;;  %v1199_v46 = vpop.permute.xlu1 %1198 }
 0x14a   : > { %v1131_v2 = vadd.f32 %v1127_v40, %v1099_v58  ;;  %v1186_v3 = vsub.f32 %v1167_v44, %v1176_v9  ;;  %v1187_v49 = vsub.f32 %v1167_v44, %v1180_v12  ;;  %v1188_v47 = vsub.f32 %v1167_v44, %v1184_v16 }
 0x14b   : > { %v1132_v45 = vadd.f32 %v1128_v6, %v1100_v31  ;;  %v1204_v20 = vrot.slane %v2129_v34, %v1959_v4  ;;  %v1208_v11 = vrot.slane %v2131_v25, %v1959_v4  ;;  %v1212_v26 = vrot.slane %v2139_v23, %v1959_v4 }
 0x14c   : > { %v1216_v27 = vrot.slane %v2164_v22, %v1959_v4  ;;  %v1161_v39 = vadd.f32 %v1157_v21, %v1129_v14  ;;  %v1162_v0 = vadd.f32 %v1158_v29, %v1130_v42  ;;  %v1189_v35 = vand.u32 2147483647, %v1185_v50 }
 0x14d   : > { %v1190_v60 = vand.u32 2147483647, %v1186_v3  ;;  %v1163_v30 = vadd.f32 %v1159_v61, %v1131_v2  ;;  %v1164_v18 = vadd.f32 %v1160_v37, %v1132_v45  ;;  %v1191_v8 = vand.u32 2147483647, %v1187_v49 }
 0x14e   : > { %v1192_v7 = vand.u32 2147483647, %v1188_v47  ;;  %v1217_v17 = vsub.f32 %v1199_v46, %v1204_v20  ;;  %v1218_v34 = vsub.f32 %v1199_v46, %v1208_v11  ;;  %v1230_v28 = vstv %s1229_s24 }
 0x14f   : > { %v1219_v38 = vsub.f32 %v1199_v46, %v1212_v26  ;;  %v1220_v25 = vsub.f32 %v1199_v46, %v1216_v27  ;;  %v1193_v5 = vadd.f32 %v1189_v35, %v1161_v39  ;;  %v1194_v9 = vadd.f32 %v1190_v60, %v1162_v0 }
 0x150   : > { %v1221_v23 = vand.u32 2147483647, %v1217_v17  ;;  %v1222_v41 = vand.u32 2147483647, %v1218_v34  ;;  %v1195_v53 = vadd.f32 %v1191_v8, %v1163_v30  ;;  %v1196_v4 = vadd.f32 %v1192_v7, %v1164_v18 }
 0x151   : > { %v1223_v22 = vand.u32 2147483647, %v1219_v38  ;;  %v1224_v12 = vand.u32 2147483647, %v1220_v25 }
 0x152   : > { %v1225_v16 = vadd.f32 %v1221_v23, %v1193_v5  ;;  %v1226_v10 = vadd.f32 %v1222_v41, %v1194_v9 }
 0x153   : > { %v1227_v15 = vadd.f32 %v1223_v22, %v1195_v53  ;;  %v1228_v13 = vadd.f32 %v1224_v12, %v1196_v4 }
 0x154   : > { %v1231_v33 = vsub.f32 %v1230_v28, %v1225_v16  ;;  %v1232_v43 = vsub.f32 %v1230_v28, %v1226_v10 }
 0x155   : > { %v1233_v54 = vsub.f32 %v1230_v28, %v1227_v15  ;;  %v1234_v57 = vsub.f32 %v1230_v28, %v1228_v13 }
 0x156   : > { %v1371_v36 = vmul.f32 -1.442695, %v1231_v33  ;;  %v1372_v55 = vmul.f32 -1.442695, %v1232_v43 }
 0x157   : > { %v1373_v48 = vmul.f32 -1.442695, %v1233_v54  ;;  %v1374_v32 = vmul.f32 -1.442695, %v1234_v57 }
 0x158   : > { %1507 = vpow2.f32 %v1371_v36 }
 0x159   : > { %1509 = vpow2.f32 %v1372_v55 }
 0x15a   : > { %1511 = vpow2.f32 %v1373_v48 }
 0x15b   : > { %1513 = vpow2.f32 %v1374_v32 }
 0x162   : > { %v1508_v51 = vpop.eup %1507 }
 0x163   : > { %v1510_v24 = vpop.eup %1509  ;;  %v1247_v63 = vadd.f32 1.0, %v1508_v51 }
 0x164   : > { %v1512_v52 = vpop.eup %1511  ;;  %v1248_v59 = vadd.f32 1.0, %v1510_v24 }
 0x165   : > { %v1514_v21 = vpop.eup %1513  ;;  %v1249_v29 = vadd.f32 1.0, %v1512_v52  ;;  %1515 = vrcp.f32 %v1247_v63 }
 0x166   : > { %v1250_v62 = vadd.f32 1.0, %v1514_v21  ;;  %1517 = vrcp.f32 %v1248_v59 }
 0x167   : > { %1519 = vrcp.f32 %v1249_v29 }
 0x168   : > { %1521 = vrcp.f32 %v1250_v62 }
 0x16f   : > { %v1516_v1 = vpop.eup %1515 }
 0x170   : > { %v1518_v19 = vpop.eup %1517  ;;  %1259 = vst [vmem:[%s176_s7] sm:$0xff] %v1516_v1 }
 0x171   : > { %v1520_v56 = vpop.eup %1519  ;;  %1260 = vst [vmem:[%s176_s7 + $0x8] sm:$0xff] %v1518_v19 }
 0x172   : > { %v1522_v58 = vpop.eup %1521  ;;  %1261 = vst [vmem:[%s176_s7 + $0x10] sm:$0xff] %v1520_v56 }
 0x173   : > { %1262 = vst [vmem:[%s176_s7 + $0x18] sm:$0xff] %v1522_v58 }
 0x174   : > { %1594 = shalt.err (!%p1591_p12)
}
 0x175   : > { %s1595_s28 = scalar_lea.hbm %s2562_s18, 512  ;;  %s1599_s11 = scalar_lea.hbm %s2608_s3, 2048 }
 0x176   : > { %p1596_p0 = scmp.ne.s32.totalorder %s2562_s18, %s1595_s28  ;;  %p1600_p13 = scmp.lt.u32.totalorder %s2562_s18, %s2608_s3 }
 0x177   : > { %p1601_p7 = scmp.lt.u32.totalorder %s1599_s11, %s1595_s28  ;;  %p1603_p8 = scmp.lt.u32.totalorder %s1595_s28, %s2562_s18 }
 0x178   : > { %p1597_p3 = pnand %p1596_p0, %p2702_p9 }
 0x179   : > { %p1602_p6 = por %p1601_p7, %p1600_p13 }
 0x17a   : > { %p1598_p11 = pneg %p1597_p3 }
 0x17b   : > { %p1604_p10 = por %p1603_p8, %p1602_p6 }
 0x17d   : > { %p1605_p5 = pnand %p1604_p10, %p1598_p11 }
 0x17f   : > { %1608 = shalt.err (!%p1605_p5)
}
 0x180   : > { %1388 = dma.vmem_to_hbm [thread:$0]  (%p2702_p9), %s2564_s10, 512, %s2562_s18, %s1264_s0  }
 0x181 PF: > { %p1405_p1 = scmp.ge.s32.totalorder %s1651_s17, 2  ;;  %s1290_s12 = sand.u32 1, %s1639_s14  }
 0x182   : > { %p2703_p2 = scmp.ne.s32.totalorder %s2617_s26, 0  ;;  %s1291_s24 = scalar_lea.sflag [#allocation6], %s1290_s12 }
 0x184   : > { %p1399_p4 = pnand %p1405_p1, %p2703_p2 }
 0x186   : > { %1634 = dma.done.wait (!%p1399_p4), %s1291_s24, 512  }
 0x187   : > { %1636 = vsyncadd (!%p1399_p4), %s1291_s24, 4294966784  ;;  %p18_p12 = scmp.ge.s32.totalorder %s1739_s19, 6   ;;  %s2704_s14 = smov %s1643_s15 }
 0x188   : > { %s2705_s15 = smov %s1647_s16  ;;  %s2706_s16 = smov %s1751_s22 }
 0x189   : > { %s2707_s17 = smov %s1739_s19  ;;  %20 = sbr.rel (!%p18_p12) target bundleno = 8 (0x8), region = 78 }
 0x190   :  { %1296 = vsyncpa [#allocation5], 1 }
 0x191   :  { %1298 = vsyncpa [#allocation5 + $0x1], 1 }
 0x192   :  { %1299 = vsyncpa [#allocation8], 1 }
 0x193   :  { %1301 = vsyncpa [#allocation8 + $0x1], 1 }
 0x194   :  { %1302 = vsyncpa [#allocation6], 1 }
 0x195   :  { %1304 = vsyncpa [#allocation6 + $0x1], 1 }

</bundles_post_ra>
